<compile_context>
chip_gen: v6e
topology: v6e:2x2x1
jax: 0.10.0
libtpu: 0.0.40
codegen_flags: <defaults>
</compile_context>

<pallas_src>
import functools
import math

import jax
import jax.numpy as jnp
from jax.experimental import pallas as pl
from jax.experimental.pallas import tpu as pltpu

NEG_SLOPE = 0.2  # SuperGATConv default negative_slope


# --------------------------------------------------------------------------
# Fused Pallas kernel: conv1 -> ELU -> conv2 -> log_softmax
# --------------------------------------------------------------------------
def _fused_net_kernel(x_ref, adj_ref, w1_ref, b1_ref, w2_ref, b2_ref, o_ref,
                      *, heads, out_ch, attention_type, sd_scale):
    H, C = heads, out_ch
    x = x_ref[...]                                   # [N, F]
    mask = adj_ref[...] > 0.0                        # computed once, shared by both layers
    NEG = jnp.float32(-1e30)

    def supergat_layer(feat, w_ext):
        # feat: [N, Fin]; w_ext: [Fin, H*C + 2*H]
        # one MXU matmul gives all head features + folded att_l/att_r terms
        proj = jnp.dot(feat, w_ext, preferred_element_type=jnp.float32)  # [N, H*C+2H]
        head_outs = []
        for h in range(H):                                                # unrolled
            xh = proj[:, h * C:(h + 1) * C]                               # [N, C]
            logits = jnp.dot(xh, xh.T, preferred_element_type=jnp.float32)  # [N, N]
            if attention_type == "MX":
                al = proj[:, H * C + h:H * C + h + 1]                     # [N, 1] source
                ar = proj[:, H * C + H + h:H * C + H + h + 1]             # [N, 1] target
                alpha = ar + al.T                                         # alpha[i,j]=ar_i+al_j
                alpha = alpha * jax.nn.sigmoid(logits)
            else:  # "SD"
                alpha = logits * sd_scale
            # leaky relu
            alpha = jnp.where(alpha >= 0, alpha, NEG_SLOPE * alpha)
            # masked softmax over sources j (per target i); self-loops keep m finite
            masked = jnp.where(mask, alpha, NEG)
            m = jnp.max(masked, axis=-1, keepdims=True)
            e = jnp.exp(masked - m)                  # masked entries underflow to 0
            denom = jnp.sum(e, axis=-1, keepdims=True)
            inv = pl.reciprocal(jnp.maximum(denom, jnp.float32(1e-30)), approx=True)
            head_outs.append(
                jnp.dot(e * inv, xh, preferred_element_type=jnp.float32))  # [N, C]
        return head_outs

    # ---- conv1: concat heads, bias, ELU ----
    h1 = jnp.concatenate(supergat_layer(x, w1_ref[...]), axis=-1)        # [N, H*C]
    h1 = h1 + b1_ref[...]
    h1 = jnp.where(h1 > 0, h1, jnp.exp(h1) - 1.0)                        # ELU

    # ---- conv2: mean over heads, bias ----
    outs2 = supergat_layer(h1, w2_ref[...])
    h2 = outs2[0]
    for t in outs2[1:]:
        h2 = h2 + t
    h2 = h2 * jnp.float32(1.0 / H) + b2_ref[...]                         # [N, C]

    # ---- log_softmax ----
    mmax = jnp.max(h2, axis=-1, keepdims=True)
    s = h2 - mmax
    lse = jnp.log(jnp.sum(jnp.exp(s), axis=-1, keepdims=True))
    o_ref[...] = s - lse


# --------------------------------------------------------------------------
# Wrapper (weight folding + single pallas_call)
# --------------------------------------------------------------------------
def _extend_weight(W, att_l, att_r, heads, out_ch):
    """Append per-head att_l / att_r projections as extra matmul columns."""
    fin = W.shape[0]
    Wh = W.reshape(fin, heads, out_ch)
    wal = jnp.einsum("fhc,hc->fh", Wh, att_l)        # [Fin, H]  (source term)
    war = jnp.einsum("fhc,hc->fh", Wh, att_r)        # [Fin, H]  (target term)
    return jnp.concatenate([W, wal, war], axis=-1).astype(jnp.float32)


def net_forward(x, adj, params, *, heads, classes, attention_type="MX"):
    """Net.forward in eval mode: dropout = identity, attention loss = 0."""
    N = x.shape[0]
    W1e = _extend_weight(params["W1"], params["al1"], params["ar1"], heads, classes)
    W2e = _extend_weight(params["W2"], params["al2"], params["ar2"], heads, classes)
    b1 = params["b1"].reshape(1, heads * classes).astype(jnp.float32)
    b2 = params["b2"].reshape(1, classes).astype(jnp.float32)

    kernel = functools.partial(
        _fused_net_kernel, heads=heads, out_ch=classes,
        attention_type=attention_type, sd_scale=1.0 / math.sqrt(classes))

    # Whole problem fits comfortably in VMEM -> no grid, full-array blocks,
    # single kernel launch.
    # TODO(synk): for large N, tile the N x N attention with an online-softmax
    # grid axis (flash-attention style) so it fits v7x's 64 MiB VMEM.
    log_probs = pl.pallas_call(
        kernel,
        out_shape=jax.ShapeDtypeStruct((N, classes), jnp.float32),
        compiler_params=pltpu.CompilerParams(vmem_limit_bytes=64 * 1024 * 1024),
    )(x.astype(jnp.float32), adj.astype(jnp.float32), W1e, b1, W2e, b2)

    # get_attention_loss() returns 0 when not training (eval mode).
    att_loss = jnp.float32(0.0)
    return log_probs, att_loss


# --------------------------------------------------------------------------
# Main
# --------------------------------------------------------------------------
if __name__ == "__main__":
    key = jax.random.PRNGKey(0)
    N, FEATS, HEADS, CLASSES = 16, 8, 4, 6
    E = 40

    ks = jax.random.split(key, 12)

    # deterministic node features and a random edge_index [2, E]
    x = jax.random.normal(ks[0], (N, FEATS), dtype=jnp.float32)
    src = jax.random.randint(ks[1], (E,), 0, N)
    tgt = jax.random.randint(ks[2], (E,), 0, N)

    # dense adjacency: edges j -> i, then (remove + add) self-loops => diag = 1
    adj = jnp.zeros((N, N), jnp.float32).at[tgt, src].set(1.0)
    adj = jnp.where(jnp.eye(N, dtype=jnp.float32) > 0, 1.0, adj)

    # deterministic parameters (glorot-ish scale)
    def init(k, shape, fan_in):
        return jax.random.normal(k, shape, dtype=jnp.float32) / math.sqrt(fan_in)

    params = {
        # conv1: Linear(FEATS -> HEADS*CLASSES, bias=False), att_l/att_r [H,C], bias [H*C]
        "W1": init(ks[3], (FEATS, HEADS * CLASSES), FEATS),
        "al1": init(ks[4], (HEADS, CLASSES), CLASSES),
        "ar1": init(ks[5], (HEADS, CLASSES), CLASSES),
        "b1": jnp.zeros((HEADS * CLASSES,), jnp.float32),
        # conv2: Linear(HEADS*CLASSES -> HEADS*CLASSES, bias=False), bias [C] (concat=False)
        "W2": init(ks[6], (HEADS * CLASSES, HEADS * CLASSES), HEADS * CLASSES),
        "al2": init(ks[7], (HEADS, CLASSES), CLASSES),
        "ar2": init(ks[8], (HEADS, CLASSES), CLASSES),
        "b2": jnp.zeros((CLASSES,), jnp.float32),
    }

    log_probs, att_loss = net_forward(x, adj, params, heads=HEADS,
                                      classes=CLASSES, attention_type="MX")
    jax.block_until_ready((log_probs, att_loss))

    assert log_probs.shape == (N, CLASSES)
    # rows of log_softmax must sum to ~1 in prob space
    assert bool(jnp.all(jnp.abs(jnp.sum(jnp.exp(log_probs), axis=-1) - 1.0) < 1e-4))
    print("KERNEL_OK")
</pallas_src>

<mosaic_0001>
module attributes {stable_mosaic.version = 11 : i64} {
  func.func @_fused_net_kernel(%arg0: memref<16x8xf32, #tpu.memory_space<vmem>>, %arg1: memref<16x16xf32, #tpu.memory_space<vmem>>, %arg2: memref<8x32xf32, #tpu.memory_space<vmem>>, %arg3: memref<1x24xf32, #tpu.memory_space<vmem>>, %arg4: memref<24x32xf32, #tpu.memory_space<vmem>>, %arg5: memref<1x6xf32, #tpu.memory_space<vmem>>, %arg6: memref<16x6xf32, #tpu.memory_space<vmem>>) attributes {dimension_semantics = [], scalar_prefetch = 0 : i64, scratch_operands = 0 : i64, tpu.core_type = #tpu.core_type<tc>} {
    %c0 = arith.constant 0 : index
    %c0_0 = arith.constant 0 : index
    %0 = vector.load %arg0[%c0, %c0_0] : memref<16x8xf32, #tpu.memory_space<vmem>>, vector<16x8xf32>
    %c0_1 = arith.constant 0 : index
    %c0_2 = arith.constant 0 : index
    %1 = vector.load %arg1[%c0_1, %c0_2] : memref<16x16xf32, #tpu.memory_space<vmem>>, vector<16x16xf32>
    %cst = arith.constant 0.000000e+00 : f32
    %2 = vector.broadcast %cst : f32 to vector<16x16xf32>
    %3 = arith.cmpf ogt, %1, %2 : vector<16x16xf32>
    %c0_3 = arith.constant 0 : index
    %c0_4 = arith.constant 0 : index
    %4 = vector.load %arg2[%c0_3, %c0_4] : memref<8x32xf32, #tpu.memory_space<vmem>>, vector<8x32xf32>
    %cst_5 = arith.constant dense<0.000000e+00> : vector<16x32xf32>
    %5 = tpu.matmul %0, %4, %cst_5 {dimension_numbers = #tpu.dot_dimension_numbers<[1], [0], [0], [1], [0, 0, 1, 1], [], []>} : vector<16x8xf32>, vector<8x32xf32>, vector<16x32xf32> -> vector<16x32xf32>
    %6 = vector.extract_strided_slice %5 {offsets = [0, 0], sizes = [16, 6], strides = [1, 1]} : vector<16x32xf32> to vector<16x6xf32>
    %7 = tpu.transpose %6, [1, 0] : vector<16x6xf32> -> vector<6x16xf32>
    %cst_6 = arith.constant dense<0.000000e+00> : vector<16x16xf32>
    %8 = tpu.matmul %6, %7, %cst_6 {dimension_numbers = #tpu.dot_dimension_numbers<[1], [0], [0], [1], [0, 0, 1, 1], [], []>} : vector<16x6xf32>, vector<6x16xf32>, vector<16x16xf32> -> vector<16x16xf32>
    %9 = vector.extract_strided_slice %5 {offsets = [0, 24], sizes = [16, 1], strides = [1, 1]} : vector<16x32xf32> to vector<16x1xf32>
    %10 = vector.extract_strided_slice %5 {offsets = [0, 28], sizes = [16, 1], strides = [1, 1]} : vector<16x32xf32> to vector<16x1xf32>
    %11 = tpu.transpose %9, [1, 0] : vector<16x1xf32> -> vector<1x16xf32>
    %12 = vector.broadcast %10 : vector<16x1xf32> to vector<16x16xf32>
    %13 = vector.broadcast %11 : vector<1x16xf32> to vector<16x16xf32>
    %14 = arith.addf %12, %13 : vector<16x16xf32>
    %15 = arith.negf %8 : vector<16x16xf32>
    %16 = math.exp %15 : vector<16x16xf32>
    %cst_7 = arith.constant 1.000000e+00 : f32
    %17 = vector.broadcast %cst_7 : f32 to vector<16x16xf32>
    %18 = arith.addf %17, %16 : vector<16x16xf32>
    %19 = arith.divf %17, %18 : vector<16x16xf32>
    %20 = arith.mulf %14, %19 : vector<16x16xf32>
    %cst_8 = arith.constant 0.000000e+00 : f32
    %21 = vector.broadcast %cst_8 : f32 to vector<16x16xf32>
    %22 = arith.cmpf oge, %20, %21 : vector<16x16xf32>
    %cst_9 = arith.constant 2.000000e-01 : f32
    %23 = vector.broadcast %cst_9 : f32 to vector<16x16xf32>
    %24 = arith.mulf %23, %20 : vector<16x16xf32>
    %25 = arith.select %22, %20, %24 : vector<16x16xi1>, vector<16x16xf32>
    %cst_10 = arith.constant -1.000000e+30 : f32
    %26 = vector.broadcast %cst_10 : f32 to vector<16x16xf32>
    %27 = arith.select %3, %25, %26 : vector<16x16xi1>, vector<16x16xf32>
    %cst_11 = arith.constant dense<0xFF800000> : vector<16xf32>
    %28 = vector.multi_reduction <maximumf>, %27, %cst_11 [1] : vector<16x16xf32> to vector<16xf32>
    %29 = vector.shape_cast %28 : vector<16xf32> to vector<16x1xf32>
    %30 = vector.broadcast %29 : vector<16x1xf32> to vector<16x16xf32>
    %31 = arith.subf %27, %30 : vector<16x16xf32>
    %32 = math.exp %31 : vector<16x16xf32>
    %cst_12 = arith.constant dense<0.000000e+00> : vector<16xf32>
    %33 = vector.multi_reduction <add>, %32, %cst_12 [1] : vector<16x16xf32> to vector<16xf32>
    %34 = vector.shape_cast %33 : vector<16xf32> to vector<16x1xf32>
    %cst_13 = arith.constant 1.000000e-30 : f32
    %35 = vector.broadcast %cst_13 : f32 to vector<16x1xf32>
    %36 = arith.maximumf %34, %35 : vector<16x1xf32>
    %37 = tpu.reciprocal %36 {approx = true} : vector<16x1xf32> -> vector<16x1xf32>
    %38 = vector.broadcast %37 : vector<16x1xf32> to vector<16x16xf32>
    %39 = arith.mulf %32, %38 : vector<16x16xf32>
    %cst_14 = arith.constant dense<0.000000e+00> : vector<16x6xf32>
    %40 = tpu.matmul %39, %6, %cst_14 {dimension_numbers = #tpu.dot_dimension_numbers<[1], [0], [0], [1], [0, 0, 1, 1], [], []>} : vector<16x16xf32>, vector<16x6xf32>, vector<16x6xf32> -> vector<16x6xf32>
    %41 = vector.extract_strided_slice %5 {offsets = [0, 6], sizes = [16, 6], strides = [1, 1]} : vector<16x32xf32> to vector<16x6xf32>
    %42 = tpu.transpose %41, [1, 0] : vector<16x6xf32> -> vector<6x16xf32>
    %cst_15 = arith.constant dense<0.000000e+00> : vector<16x16xf32>
    %43 = tpu.matmul %41, %42, %cst_15 {dimension_numbers = #tpu.dot_dimension_numbers<[1], [0], [0], [1], [0, 0, 1, 1], [], []>} : vector<16x6xf32>, vector<6x16xf32>, vector<16x16xf32> -> vector<16x16xf32>
    %44 = vector.extract_strided_slice %5 {offsets = [0, 25], sizes = [16, 1], strides = [1, 1]} : vector<16x32xf32> to vector<16x1xf32>
    %45 = vector.extract_strided_slice %5 {offsets = [0, 29], sizes = [16, 1], strides = [1, 1]} : vector<16x32xf32> to vector<16x1xf32>
    %46 = tpu.transpose %44, [1, 0] : vector<16x1xf32> -> vector<1x16xf32>
    %47 = vector.broadcast %45 : vector<16x1xf32> to vector<16x16xf32>
    %48 = vector.broadcast %46 : vector<1x16xf32> to vector<16x16xf32>
    %49 = arith.addf %47, %48 : vector<16x16xf32>
    %50 = arith.negf %43 : vector<16x16xf32>
    %51 = math.exp %50 : vector<16x16xf32>
    %cst_16 = arith.constant 1.000000e+00 : f32
    %52 = vector.broadcast %cst_16 : f32 to vector<16x16xf32>
    %53 = arith.addf %52, %51 : vector<16x16xf32>
    %54 = arith.divf %52, %53 : vector<16x16xf32>
    %55 = arith.mulf %49, %54 : vector<16x16xf32>
    %cst_17 = arith.constant 0.000000e+00 : f32
    %56 = vector.broadcast %cst_17 : f32 to vector<16x16xf32>
    %57 = arith.cmpf oge, %55, %56 : vector<16x16xf32>
    %cst_18 = arith.constant 2.000000e-01 : f32
    %58 = vector.broadcast %cst_18 : f32 to vector<16x16xf32>
    %59 = arith.mulf %58, %55 : vector<16x16xf32>
    %60 = arith.select %57, %55, %59 : vector<16x16xi1>, vector<16x16xf32>
    %cst_19 = arith.constant -1.000000e+30 : f32
    %61 = vector.broadcast %cst_19 : f32 to vector<16x16xf32>
    %62 = arith.select %3, %60, %61 : vector<16x16xi1>, vector<16x16xf32>
    %cst_20 = arith.constant dense<0xFF800000> : vector<16xf32>
    %63 = vector.multi_reduction <maximumf>, %62, %cst_20 [1] : vector<16x16xf32> to vector<16xf32>
    %64 = vector.shape_cast %63 : vector<16xf32> to vector<16x1xf32>
    %65 = vector.broadcast %64 : vector<16x1xf32> to vector<16x16xf32>
    %66 = arith.subf %62, %65 : vector<16x16xf32>
    %67 = math.exp %66 : vector<16x16xf32>
    %cst_21 = arith.constant dense<0.000000e+00> : vector<16xf32>
    %68 = vector.multi_reduction <add>, %67, %cst_21 [1] : vector<16x16xf32> to vector<16xf32>
    %69 = vector.shape_cast %68 : vector<16xf32> to vector<16x1xf32>
    %cst_22 = arith.constant 1.000000e-30 : f32
    %70 = vector.broadcast %cst_22 : f32 to vector<16x1xf32>
    %71 = arith.maximumf %69, %70 : vector<16x1xf32>
    %72 = tpu.reciprocal %71 {approx = true} : vector<16x1xf32> -> vector<16x1xf32>
    %73 = vector.broadcast %72 : vector<16x1xf32> to vector<16x16xf32>
    %74 = arith.mulf %67, %73 : vector<16x16xf32>
    %cst_23 = arith.constant dense<0.000000e+00> : vector<16x6xf32>
    %75 = tpu.matmul %74, %41, %cst_23 {dimension_numbers = #tpu.dot_dimension_numbers<[1], [0], [0], [1], [0, 0, 1, 1], [], []>} : vector<16x16xf32>, vector<16x6xf32>, vector<16x6xf32> -> vector<16x6xf32>
    %76 = vector.extract_strided_slice %5 {offsets = [0, 12], sizes = [16, 6], strides = [1, 1]} : vector<16x32xf32> to vector<16x6xf32>
    %77 = tpu.transpose %76, [1, 0] : vector<16x6xf32> -> vector<6x16xf32>
    %cst_24 = arith.constant dense<0.000000e+00> : vector<16x16xf32>
    %78 = tpu.matmul %76, %77, %cst_24 {dimension_numbers = #tpu.dot_dimension_numbers<[1], [0], [0], [1], [0, 0, 1, 1], [], []>} : vector<16x6xf32>, vector<6x16xf32>, vector<16x16xf32> -> vector<16x16xf32>
    %79 = vector.extract_strided_slice %5 {offsets = [0, 26], sizes = [16, 1], strides = [1, 1]} : vector<16x32xf32> to vector<16x1xf32>
    %80 = vector.extract_strided_slice %5 {offsets = [0, 30], sizes = [16, 1], strides = [1, 1]} : vector<16x32xf32> to vector<16x1xf32>
    %81 = tpu.transpose %79, [1, 0] : vector<16x1xf32> -> vector<1x16xf32>
    %82 = vector.broadcast %80 : vector<16x1xf32> to vector<16x16xf32>
    %83 = vector.broadcast %81 : vector<1x16xf32> to vector<16x16xf32>
    %84 = arith.addf %82, %83 : vector<16x16xf32>
    %85 = arith.negf %78 : vector<16x16xf32>
    %86 = math.exp %85 : vector<16x16xf32>
    %cst_25 = arith.constant 1.000000e+00 : f32
    %87 = vector.broadcast %cst_25 : f32 to vector<16x16xf32>
    %88 = arith.addf %87, %86 : vector<16x16xf32>
    %89 = arith.divf %87, %88 : vector<16x16xf32>
    %90 = arith.mulf %84, %89 : vector<16x16xf32>
    %cst_26 = arith.constant 0.000000e+00 : f32
    %91 = vector.broadcast %cst_26 : f32 to vector<16x16xf32>
    %92 = arith.cmpf oge, %90, %91 : vector<16x16xf32>
    %cst_27 = arith.constant 2.000000e-01 : f32
    %93 = vector.broadcast %cst_27 : f32 to vector<16x16xf32>
    %94 = arith.mulf %93, %90 : vector<16x16xf32>
    %95 = arith.select %92, %90, %94 : vector<16x16xi1>, vector<16x16xf32>
    %cst_28 = arith.constant -1.000000e+30 : f32
    %96 = vector.broadcast %cst_28 : f32 to vector<16x16xf32>
    %97 = arith.select %3, %95, %96 : vector<16x16xi1>, vector<16x16xf32>
    %cst_29 = arith.constant dense<0xFF800000> : vector<16xf32>
    %98 = vector.multi_reduction <maximumf>, %97, %cst_29 [1] : vector<16x16xf32> to vector<16xf32>
    %99 = vector.shape_cast %98 : vector<16xf32> to vector<16x1xf32>
    %100 = vector.broadcast %99 : vector<16x1xf32> to vector<16x16xf32>
    %101 = arith.subf %97, %100 : vector<16x16xf32>
    %102 = math.exp %101 : vector<16x16xf32>
    %cst_30 = arith.constant dense<0.000000e+00> : vector<16xf32>
    %103 = vector.multi_reduction <add>, %102, %cst_30 [1] : vector<16x16xf32> to vector<16xf32>
    %104 = vector.shape_cast %103 : vector<16xf32> to vector<16x1xf32>
    %cst_31 = arith.constant 1.000000e-30 : f32
    %105 = vector.broadcast %cst_31 : f32 to vector<16x1xf32>
    %106 = arith.maximumf %104, %105 : vector<16x1xf32>
    %107 = tpu.reciprocal %106 {approx = true} : vector<16x1xf32> -> vector<16x1xf32>
    %108 = vector.broadcast %107 : vector<16x1xf32> to vector<16x16xf32>
    %109 = arith.mulf %102, %108 : vector<16x16xf32>
    %cst_32 = arith.constant dense<0.000000e+00> : vector<16x6xf32>
    %110 = tpu.matmul %109, %76, %cst_32 {dimension_numbers = #tpu.dot_dimension_numbers<[1], [0], [0], [1], [0, 0, 1, 1], [], []>} : vector<16x16xf32>, vector<16x6xf32>, vector<16x6xf32> -> vector<16x6xf32>
    %111 = vector.extract_strided_slice %5 {offsets = [0, 18], sizes = [16, 6], strides = [1, 1]} : vector<16x32xf32> to vector<16x6xf32>
    %112 = tpu.transpose %111, [1, 0] : vector<16x6xf32> -> vector<6x16xf32>
    %cst_33 = arith.constant dense<0.000000e+00> : vector<16x16xf32>
    %113 = tpu.matmul %111, %112, %cst_33 {dimension_numbers = #tpu.dot_dimension_numbers<[1], [0], [0], [1], [0, 0, 1, 1], [], []>} : vector<16x6xf32>, vector<6x16xf32>, vector<16x16xf32> -> vector<16x16xf32>
    %114 = vector.extract_strided_slice %5 {offsets = [0, 27], sizes = [16, 1], strides = [1, 1]} : vector<16x32xf32> to vector<16x1xf32>
    %115 = vector.extract_strided_slice %5 {offsets = [0, 31], sizes = [16, 1], strides = [1, 1]} : vector<16x32xf32> to vector<16x1xf32>
    %116 = tpu.transpose %114, [1, 0] : vector<16x1xf32> -> vector<1x16xf32>
    %117 = vector.broadcast %115 : vector<16x1xf32> to vector<16x16xf32>
    %118 = vector.broadcast %116 : vector<1x16xf32> to vector<16x16xf32>
    %119 = arith.addf %117, %118 : vector<16x16xf32>
    %120 = arith.negf %113 : vector<16x16xf32>
    %121 = math.exp %120 : vector<16x16xf32>
    %cst_34 = arith.constant 1.000000e+00 : f32
    %122 = vector.broadcast %cst_34 : f32 to vector<16x16xf32>
    %123 = arith.addf %122, %121 : vector<16x16xf32>
    %124 = arith.divf %122, %123 : vector<16x16xf32>
    %125 = arith.mulf %119, %124 : vector<16x16xf32>
    %cst_35 = arith.constant 0.000000e+00 : f32
    %126 = vector.broadcast %cst_35 : f32 to vector<16x16xf32>
    %127 = arith.cmpf oge, %125, %126 : vector<16x16xf32>
    %cst_36 = arith.constant 2.000000e-01 : f32
    %128 = vector.broadcast %cst_36 : f32 to vector<16x16xf32>
    %129 = arith.mulf %128, %125 : vector<16x16xf32>
    %130 = arith.select %127, %125, %129 : vector<16x16xi1>, vector<16x16xf32>
    %cst_37 = arith.constant -1.000000e+30 : f32
    %131 = vector.broadcast %cst_37 : f32 to vector<16x16xf32>
    %132 = arith.select %3, %130, %131 : vector<16x16xi1>, vector<16x16xf32>
    %cst_38 = arith.constant dense<0xFF800000> : vector<16xf32>
    %133 = vector.multi_reduction <maximumf>, %132, %cst_38 [1] : vector<16x16xf32> to vector<16xf32>
    %134 = vector.shape_cast %133 : vector<16xf32> to vector<16x1xf32>
    %135 = vector.broadcast %134 : vector<16x1xf32> to vector<16x16xf32>
    %136 = arith.subf %132, %135 : vector<16x16xf32>
    %137 = math.exp %136 : vector<16x16xf32>
    %cst_39 = arith.constant dense<0.000000e+00> : vector<16xf32>
    %138 = vector.multi_reduction <add>, %137, %cst_39 [1] : vector<16x16xf32> to vector<16xf32>
    %139 = vector.shape_cast %138 : vector<16xf32> to vector<16x1xf32>
    %cst_40 = arith.constant 1.000000e-30 : f32
    %140 = vector.broadcast %cst_40 : f32 to vector<16x1xf32>
    %141 = arith.maximumf %139, %140 : vector<16x1xf32>
    %142 = tpu.reciprocal %141 {approx = true} : vector<16x1xf32> -> vector<16x1xf32>
    %143 = vector.broadcast %142 : vector<16x1xf32> to vector<16x16xf32>
    %144 = arith.mulf %137, %143 : vector<16x16xf32>
    %cst_41 = arith.constant dense<0.000000e+00> : vector<16x6xf32>
    %145 = tpu.matmul %144, %111, %cst_41 {dimension_numbers = #tpu.dot_dimension_numbers<[1], [0], [0], [1], [0, 0, 1, 1], [], []>} : vector<16x16xf32>, vector<16x6xf32>, vector<16x6xf32> -> vector<16x6xf32>
    %146 = tpu.concatenate %40, %75, %110, %145 in 1 : vector<16x6xf32>, vector<16x6xf32>, vector<16x6xf32>, vector<16x6xf32> -> vector<16x24xf32>
    %c0_42 = arith.constant 0 : index
    %c0_43 = arith.constant 0 : index
    %147 = vector.load %arg3[%c0_42, %c0_43] : memref<1x24xf32, #tpu.memory_space<vmem>>, vector<1x24xf32>
    %148 = vector.broadcast %147 : vector<1x24xf32> to vector<16x24xf32>
    %149 = arith.addf %146, %148 : vector<16x24xf32>
    %cst_44 = arith.constant 0.000000e+00 : f32
    %150 = vector.broadcast %cst_44 : f32 to vector<16x24xf32>
    %151 = arith.cmpf ogt, %149, %150 : vector<16x24xf32>
    %152 = math.exp %149 : vector<16x24xf32>
    %cst_45 = arith.constant 1.000000e+00 : f32
    %153 = vector.broadcast %cst_45 : f32 to vector<16x24xf32>
    %154 = arith.subf %152, %153 : vector<16x24xf32>
    %155 = arith.select %151, %149, %154 : vector<16x24xi1>, vector<16x24xf32>
    %c0_46 = arith.constant 0 : index
    %c0_47 = arith.constant 0 : index
    %156 = vector.load %arg4[%c0_46, %c0_47] : memref<24x32xf32, #tpu.memory_space<vmem>>, vector<24x32xf32>
    %cst_48 = arith.constant dense<0.000000e+00> : vector<16x32xf32>
    %157 = tpu.matmul %155, %156, %cst_48 {dimension_numbers = #tpu.dot_dimension_numbers<[1], [0], [0], [1], [0, 0, 1, 1], [], []>} : vector<16x24xf32>, vector<24x32xf32>, vector<16x32xf32> -> vector<16x32xf32>
    %158 = vector.extract_strided_slice %157 {offsets = [0, 0], sizes = [16, 6], strides = [1, 1]} : vector<16x32xf32> to vector<16x6xf32>
    %159 = tpu.transpose %158, [1, 0] : vector<16x6xf32> -> vector<6x16xf32>
    %cst_49 = arith.constant dense<0.000000e+00> : vector<16x16xf32>
    %160 = tpu.matmul %158, %159, %cst_49 {dimension_numbers = #tpu.dot_dimension_numbers<[1], [0], [0], [1], [0, 0, 1, 1], [], []>} : vector<16x6xf32>, vector<6x16xf32>, vector<16x16xf32> -> vector<16x16xf32>
    %161 = vector.extract_strided_slice %157 {offsets = [0, 24], sizes = [16, 1], strides = [1, 1]} : vector<16x32xf32> to vector<16x1xf32>
    %162 = vector.extract_strided_slice %157 {offsets = [0, 28], sizes = [16, 1], strides = [1, 1]} : vector<16x32xf32> to vector<16x1xf32>
    %163 = tpu.transpose %161, [1, 0] : vector<16x1xf32> -> vector<1x16xf32>
    %164 = vector.broadcast %162 : vector<16x1xf32> to vector<16x16xf32>
    %165 = vector.broadcast %163 : vector<1x16xf32> to vector<16x16xf32>
    %166 = arith.addf %164, %165 : vector<16x16xf32>
    %167 = arith.negf %160 : vector<16x16xf32>
    %168 = math.exp %167 : vector<16x16xf32>
    %cst_50 = arith.constant 1.000000e+00 : f32
    %169 = vector.broadcast %cst_50 : f32 to vector<16x16xf32>
    %170 = arith.addf %169, %168 : vector<16x16xf32>
    %171 = arith.divf %169, %170 : vector<16x16xf32>
    %172 = arith.mulf %166, %171 : vector<16x16xf32>
    %cst_51 = arith.constant 0.000000e+00 : f32
    %173 = vector.broadcast %cst_51 : f32 to vector<16x16xf32>
    %174 = arith.cmpf oge, %172, %173 : vector<16x16xf32>
    %cst_52 = arith.constant 2.000000e-01 : f32
    %175 = vector.broadcast %cst_52 : f32 to vector<16x16xf32>
    %176 = arith.mulf %175, %172 : vector<16x16xf32>
    %177 = arith.select %174, %172, %176 : vector<16x16xi1>, vector<16x16xf32>
    %cst_53 = arith.constant -1.000000e+30 : f32
    %178 = vector.broadcast %cst_53 : f32 to vector<16x16xf32>
    %179 = arith.select %3, %177, %178 : vector<16x16xi1>, vector<16x16xf32>
    %cst_54 = arith.constant dense<0xFF800000> : vector<16xf32>
    %180 = vector.multi_reduction <maximumf>, %179, %cst_54 [1] : vector<16x16xf32> to vector<16xf32>
    %181 = vector.shape_cast %180 : vector<16xf32> to vector<16x1xf32>
    %182 = vector.broadcast %181 : vector<16x1xf32> to vector<16x16xf32>
    %183 = arith.subf %179, %182 : vector<16x16xf32>
    %184 = math.exp %183 : vector<16x16xf32>
    %cst_55 = arith.constant dense<0.000000e+00> : vector<16xf32>
    %185 = vector.multi_reduction <add>, %184, %cst_55 [1] : vector<16x16xf32> to vector<16xf32>
    %186 = vector.shape_cast %185 : vector<16xf32> to vector<16x1xf32>
    %cst_56 = arith.constant 1.000000e-30 : f32
    %187 = vector.broadcast %cst_56 : f32 to vector<16x1xf32>
    %188 = arith.maximumf %186, %187 : vector<16x1xf32>
    %189 = tpu.reciprocal %188 {approx = true} : vector<16x1xf32> -> vector<16x1xf32>
    %190 = vector.broadcast %189 : vector<16x1xf32> to vector<16x16xf32>
    %191 = arith.mulf %184, %190 : vector<16x16xf32>
    %cst_57 = arith.constant dense<0.000000e+00> : vector<16x6xf32>
    %192 = tpu.matmul %191, %158, %cst_57 {dimension_numbers = #tpu.dot_dimension_numbers<[1], [0], [0], [1], [0, 0, 1, 1], [], []>} : vector<16x16xf32>, vector<16x6xf32>, vector<16x6xf32> -> vector<16x6xf32>
    %193 = vector.extract_strided_slice %157 {offsets = [0, 6], sizes = [16, 6], strides = [1, 1]} : vector<16x32xf32> to vector<16x6xf32>
    %194 = tpu.transpose %193, [1, 0] : vector<16x6xf32> -> vector<6x16xf32>
    %cst_58 = arith.constant dense<0.000000e+00> : vector<16x16xf32>
    %195 = tpu.matmul %193, %194, %cst_58 {dimension_numbers = #tpu.dot_dimension_numbers<[1], [0], [0], [1], [0, 0, 1, 1], [], []>} : vector<16x6xf32>, vector<6x16xf32>, vector<16x16xf32> -> vector<16x16xf32>
    %196 = vector.extract_strided_slice %157 {offsets = [0, 25], sizes = [16, 1], strides = [1, 1]} : vector<16x32xf32> to vector<16x1xf32>
    %197 = vector.extract_strided_slice %157 {offsets = [0, 29], sizes = [16, 1], strides = [1, 1]} : vector<16x32xf32> to vector<16x1xf32>
    %198 = tpu.transpose %196, [1, 0] : vector<16x1xf32> -> vector<1x16xf32>
    %199 = vector.broadcast %197 : vector<16x1xf32> to vector<16x16xf32>
    %200 = vector.broadcast %198 : vector<1x16xf32> to vector<16x16xf32>
    %201 = arith.addf %199, %200 : vector<16x16xf32>
    %202 = arith.negf %195 : vector<16x16xf32>
    %203 = math.exp %202 : vector<16x16xf32>
    %cst_59 = arith.constant 1.000000e+00 : f32
    %204 = vector.broadcast %cst_59 : f32 to vector<16x16xf32>
    %205 = arith.addf %204, %203 : vector<16x16xf32>
    %206 = arith.divf %204, %205 : vector<16x16xf32>
    %207 = arith.mulf %201, %206 : vector<16x16xf32>
    %cst_60 = arith.constant 0.000000e+00 : f32
    %208 = vector.broadcast %cst_60 : f32 to vector<16x16xf32>
    %209 = arith.cmpf oge, %207, %208 : vector<16x16xf32>
    %cst_61 = arith.constant 2.000000e-01 : f32
    %210 = vector.broadcast %cst_61 : f32 to vector<16x16xf32>
    %211 = arith.mulf %210, %207 : vector<16x16xf32>
    %212 = arith.select %209, %207, %211 : vector<16x16xi1>, vector<16x16xf32>
    %cst_62 = arith.constant -1.000000e+30 : f32
    %213 = vector.broadcast %cst_62 : f32 to vector<16x16xf32>
    %214 = arith.select %3, %212, %213 : vector<16x16xi1>, vector<16x16xf32>
    %cst_63 = arith.constant dense<0xFF800000> : vector<16xf32>
    %215 = vector.multi_reduction <maximumf>, %214, %cst_63 [1] : vector<16x16xf32> to vector<16xf32>
    %216 = vector.shape_cast %215 : vector<16xf32> to vector<16x1xf32>
    %217 = vector.broadcast %216 : vector<16x1xf32> to vector<16x16xf32>
    %218 = arith.subf %214, %217 : vector<16x16xf32>
    %219 = math.exp %218 : vector<16x16xf32>
    %cst_64 = arith.constant dense<0.000000e+00> : vector<16xf32>
    %220 = vector.multi_reduction <add>, %219, %cst_64 [1] : vector<16x16xf32> to vector<16xf32>
    %221 = vector.shape_cast %220 : vector<16xf32> to vector<16x1xf32>
    %cst_65 = arith.constant 1.000000e-30 : f32
    %222 = vector.broadcast %cst_65 : f32 to vector<16x1xf32>
    %223 = arith.maximumf %221, %222 : vector<16x1xf32>
    %224 = tpu.reciprocal %223 {approx = true} : vector<16x1xf32> -> vector<16x1xf32>
    %225 = vector.broadcast %224 : vector<16x1xf32> to vector<16x16xf32>
    %226 = arith.mulf %219, %225 : vector<16x16xf32>
    %cst_66 = arith.constant dense<0.000000e+00> : vector<16x6xf32>
    %227 = tpu.matmul %226, %193, %cst_66 {dimension_numbers = #tpu.dot_dimension_numbers<[1], [0], [0], [1], [0, 0, 1, 1], [], []>} : vector<16x16xf32>, vector<16x6xf32>, vector<16x6xf32> -> vector<16x6xf32>
    %228 = vector.extract_strided_slice %157 {offsets = [0, 12], sizes = [16, 6], strides = [1, 1]} : vector<16x32xf32> to vector<16x6xf32>
    %229 = tpu.transpose %228, [1, 0] : vector<16x6xf32> -> vector<6x16xf32>
    %cst_67 = arith.constant dense<0.000000e+00> : vector<16x16xf32>
    %230 = tpu.matmul %228, %229, %cst_67 {dimension_numbers = #tpu.dot_dimension_numbers<[1], [0], [0], [1], [0, 0, 1, 1], [], []>} : vector<16x6xf32>, vector<6x16xf32>, vector<16x16xf32> -> vector<16x16xf32>
    %231 = vector.extract_strided_slice %157 {offsets = [0, 26], sizes = [16, 1], strides = [1, 1]} : vector<16x32xf32> to vector<16x1xf32>
    %232 = vector.extract_strided_slice %157 {offsets = [0, 30], sizes = [16, 1], strides = [1, 1]} : vector<16x32xf32> to vector<16x1xf32>
    %233 = tpu.transpose %231, [1, 0] : vector<16x1xf32> -> vector<1x16xf32>
    %234 = vector.broadcast %232 : vector<16x1xf32> to vector<16x16xf32>
    %235 = vector.broadcast %233 : vector<1x16xf32> to vector<16x16xf32>
    %236 = arith.addf %234, %235 : vector<16x16xf32>
    %237 = arith.negf %230 : vector<16x16xf32>
    %238 = math.exp %237 : vector<16x16xf32>
    %cst_68 = arith.constant 1.000000e+00 : f32
    %239 = vector.broadcast %cst_68 : f32 to vector<16x16xf32>
    %240 = arith.addf %239, %238 : vector<16x16xf32>
    %241 = arith.divf %239, %240 : vector<16x16xf32>
    %242 = arith.mulf %236, %241 : vector<16x16xf32>
    %cst_69 = arith.constant 0.000000e+00 : f32
    %243 = vector.broadcast %cst_69 : f32 to vector<16x16xf32>
    %244 = arith.cmpf oge, %242, %243 : vector<16x16xf32>
    %cst_70 = arith.constant 2.000000e-01 : f32
    %245 = vector.broadcast %cst_70 : f32 to vector<16x16xf32>
    %246 = arith.mulf %245, %242 : vector<16x16xf32>
    %247 = arith.select %244, %242, %246 : vector<16x16xi1>, vector<16x16xf32>
    %cst_71 = arith.constant -1.000000e+30 : f32
    %248 = vector.broadcast %cst_71 : f32 to vector<16x16xf32>
    %249 = arith.select %3, %247, %248 : vector<16x16xi1>, vector<16x16xf32>
    %cst_72 = arith.constant dense<0xFF800000> : vector<16xf32>
    %250 = vector.multi_reduction <maximumf>, %249, %cst_72 [1] : vector<16x16xf32> to vector<16xf32>
    %251 = vector.shape_cast %250 : vector<16xf32> to vector<16x1xf32>
    %252 = vector.broadcast %251 : vector<16x1xf32> to vector<16x16xf32>
    %253 = arith.subf %249, %252 : vector<16x16xf32>
    %254 = math.exp %253 : vector<16x16xf32>
    %cst_73 = arith.constant dense<0.000000e+00> : vector<16xf32>
    %255 = vector.multi_reduction <add>, %254, %cst_73 [1] : vector<16x16xf32> to vector<16xf32>
    %256 = vector.shape_cast %255 : vector<16xf32> to vector<16x1xf32>
    %cst_74 = arith.constant 1.000000e-30 : f32
    %257 = vector.broadcast %cst_74 : f32 to vector<16x1xf32>
    %258 = arith.maximumf %256, %257 : vector<16x1xf32>
    %259 = tpu.reciprocal %258 {approx = true} : vector<16x1xf32> -> vector<16x1xf32>
    %260 = vector.broadcast %259 : vector<16x1xf32> to vector<16x16xf32>
    %261 = arith.mulf %254, %260 : vector<16x16xf32>
    %cst_75 = arith.constant dense<0.000000e+00> : vector<16x6xf32>
    %262 = tpu.matmul %261, %228, %cst_75 {dimension_numbers = #tpu.dot_dimension_numbers<[1], [0], [0], [1], [0, 0, 1, 1], [], []>} : vector<16x16xf32>, vector<16x6xf32>, vector<16x6xf32> -> vector<16x6xf32>
    %263 = vector.extract_strided_slice %157 {offsets = [0, 18], sizes = [16, 6], strides = [1, 1]} : vector<16x32xf32> to vector<16x6xf32>
    %264 = tpu.transpose %263, [1, 0] : vector<16x6xf32> -> vector<6x16xf32>
    %cst_76 = arith.constant dense<0.000000e+00> : vector<16x16xf32>
    %265 = tpu.matmul %263, %264, %cst_76 {dimension_numbers = #tpu.dot_dimension_numbers<[1], [0], [0], [1], [0, 0, 1, 1], [], []>} : vector<16x6xf32>, vector<6x16xf32>, vector<16x16xf32> -> vector<16x16xf32>
    %266 = vector.extract_strided_slice %157 {offsets = [0, 27], sizes = [16, 1], strides = [1, 1]} : vector<16x32xf32> to vector<16x1xf32>
    %267 = vector.extract_strided_slice %157 {offsets = [0, 31], sizes = [16, 1], strides = [1, 1]} : vector<16x32xf32> to vector<16x1xf32>
    %268 = tpu.transpose %266, [1, 0] : vector<16x1xf32> -> vector<1x16xf32>
    %269 = vector.broadcast %267 : vector<16x1xf32> to vector<16x16xf32>
    %270 = vector.broadcast %268 : vector<1x16xf32> to vector<16x16xf32>
    %271 = arith.addf %269, %270 : vector<16x16xf32>
    %272 = arith.negf %265 : vector<16x16xf32>
    %273 = math.exp %272 : vector<16x16xf32>
    %cst_77 = arith.constant 1.000000e+00 : f32
    %274 = vector.broadcast %cst_77 : f32 to vector<16x16xf32>
    %275 = arith.addf %274, %273 : vector<16x16xf32>
    %276 = arith.divf %274, %275 : vector<16x16xf32>
    %277 = arith.mulf %271, %276 : vector<16x16xf32>
    %cst_78 = arith.constant 0.000000e+00 : f32
    %278 = vector.broadcast %cst_78 : f32 to vector<16x16xf32>
    %279 = arith.cmpf oge, %277, %278 : vector<16x16xf32>
    %cst_79 = arith.constant 2.000000e-01 : f32
    %280 = vector.broadcast %cst_79 : f32 to vector<16x16xf32>
    %281 = arith.mulf %280, %277 : vector<16x16xf32>
    %282 = arith.select %279, %277, %281 : vector<16x16xi1>, vector<16x16xf32>
    %cst_80 = arith.constant -1.000000e+30 : f32
    %283 = vector.broadcast %cst_80 : f32 to vector<16x16xf32>
    %284 = arith.select %3, %282, %283 : vector<16x16xi1>, vector<16x16xf32>
    %cst_81 = arith.constant dense<0xFF800000> : vector<16xf32>
    %285 = vector.multi_reduction <maximumf>, %284, %cst_81 [1] : vector<16x16xf32> to vector<16xf32>
    %286 = vector.shape_cast %285 : vector<16xf32> to vector<16x1xf32>
    %287 = vector.broadcast %286 : vector<16x1xf32> to vector<16x16xf32>
    %288 = arith.subf %284, %287 : vector<16x16xf32>
    %289 = math.exp %288 : vector<16x16xf32>
    %cst_82 = arith.constant dense<0.000000e+00> : vector<16xf32>
    %290 = vector.multi_reduction <add>, %289, %cst_82 [1] : vector<16x16xf32> to vector<16xf32>
    %291 = vector.shape_cast %290 : vector<16xf32> to vector<16x1xf32>
    %cst_83 = arith.constant 1.000000e-30 : f32
    %292 = vector.broadcast %cst_83 : f32 to vector<16x1xf32>
    %293 = arith.maximumf %291, %292 : vector<16x1xf32>
    %294 = tpu.reciprocal %293 {approx = true} : vector<16x1xf32> -> vector<16x1xf32>
    %295 = vector.broadcast %294 : vector<16x1xf32> to vector<16x16xf32>
    %296 = arith.mulf %289, %295 : vector<16x16xf32>
    %cst_84 = arith.constant dense<0.000000e+00> : vector<16x6xf32>
    %297 = tpu.matmul %296, %263, %cst_84 {dimension_numbers = #tpu.dot_dimension_numbers<[1], [0], [0], [1], [0, 0, 1, 1], [], []>} : vector<16x16xf32>, vector<16x6xf32>, vector<16x6xf32> -> vector<16x6xf32>
    %298 = arith.addf %192, %227 : vector<16x6xf32>
    %299 = arith.addf %298, %262 : vector<16x6xf32>
    %300 = arith.addf %299, %297 : vector<16x6xf32>
    %cst_85 = arith.constant 2.500000e-01 : f32
    %301 = vector.broadcast %cst_85 : f32 to vector<16x6xf32>
    %302 = arith.mulf %300, %301 : vector<16x6xf32>
    %c0_86 = arith.constant 0 : index
    %c0_87 = arith.constant 0 : index
    %303 = vector.load %arg5[%c0_86, %c0_87] : memref<1x6xf32, #tpu.memory_space<vmem>>, vector<1x6xf32>
    %304 = vector.broadcast %303 : vector<1x6xf32> to vector<16x6xf32>
    %305 = arith.addf %302, %304 : vector<16x6xf32>
    %cst_88 = arith.constant dense<0xFF800000> : vector<16xf32>
    %306 = vector.multi_reduction <maximumf>, %305, %cst_88 [1] : vector<16x6xf32> to vector<16xf32>
    %307 = vector.shape_cast %306 : vector<16xf32> to vector<16x1xf32>
    %308 = vector.broadcast %307 : vector<16x1xf32> to vector<16x6xf32>
    %309 = arith.subf %305, %308 : vector<16x6xf32>
    %310 = math.exp %309 : vector<16x6xf32>
    %cst_89 = arith.constant dense<0.000000e+00> : vector<16xf32>
    %311 = vector.multi_reduction <add>, %310, %cst_89 [1] : vector<16x6xf32> to vector<16xf32>
    %312 = vector.shape_cast %311 : vector<16xf32> to vector<16x1xf32>
    %313 = math.log %312 : vector<16x1xf32>
    %314 = vector.broadcast %313 : vector<16x1xf32> to vector<16x6xf32>
    %315 = arith.subf %309, %314 : vector<16x6xf32>
    %c0_90 = arith.constant 0 : index
    %c0_91 = arith.constant 0 : index
    %316 = vector.load %arg6[%c0_90, %c0_91] : memref<16x6xf32, #tpu.memory_space<vmem>>, vector<16x6xf32>
    tpu.vector_store %arg6[%c0_90, %c0_91], %315 {strides = array<i32>} : memref<16x6xf32, #tpu.memory_space<vmem>>, vector<16x6xf32>,
    return
  }
}

</mosaic_0001>

<bundles_post_ra>
// kernel: tpu_custom_call.1
= control target key start
LH: loop header
LB: loop body
LE: loop exit
PB: predicated region body
PF: predicated region fallthrough
CT: control target
= control target key end

     0   :  { %11 = vsyncpa [#allocation3], 0  ;;  %s3301_s0 = inlined_call_operand.vmem [shape: f32[16,8], index: 0, kind: input, shape index: {}]   ;;  %s3302_s1 = inlined_call_operand.hbm [shape: f32[16,16], index: 1, kind: input, shape index: {}]   ;;  %s3303_s2 = inlined_call_operand.hbm [shape: f32[8,32], index: 2, kind: input, shape index: {}]   ;;  %s3304_s3 = inlined_call_operand.vmem [shape: f32[1,24], index: 3, kind: input, shape index: {}]   ;;  %s3305_s4 = inlined_call_operand.vmem [shape: f32[24,32], index: 4, kind: input, shape index: {}]   ;;  %s3306_s5 = inlined_call_operand.vmem [shape: f32[1,6], index: 5, kind: input, shape index: {}]   ;;  %s3307_s6 = inlined_call_operand.vmem [shape: f32[16,6], index: 6, kind: output, shape index: {}]  }
   0x1   :  { %12 = vsyncpa [#allocation5], 0  ;;  %s2913_s21 = smov [#allocation2]  }
   0x2   :  { %s20_s22 = sshll.u32 %s2913_s21, 4  ;;  %s21_s22 = int_to_ptr.vmem [resolvable:$true] %s20_s22 }
   0x3   :  { %s2877_s23 = scalar_lea.vmem %s21_s22, 256  ;;  %p2882_p1 = scmp.lt.s32.totalorder %s21_s22, %s21_s22 }
   0x4   :  { %p2878_p0 = scmp.ne.s32.totalorder %s21_s22, %s2877_s23  ;;  %p2883_p2 = scmp.lt.s32.totalorder %s2877_s23, %s2877_s23 }
   0x6   :  { %p2884_p3 = por %p2883_p2, %p2882_p1 }
   0x8   :  { %p2885_p4 = pnand %p2884_p3, %p2878_p0 }
   0xa   :  { %2888 = shalt.err (!%p2885_p4)
}
   0xb   :  { %s2914_s24 = smov 128   ;;  %s2915_s25 = smov 8  }
   0xc   :  { %26 = dma.hbm_to_vmem [thread:$0]  %s3302_s1, 256, %s21_s22, [#allocation3], %s2914_s24, %s2914_s24, %s2915_s25  }
   0xd   :  { %s2916_s28 = smov [#allocation4]  }
   0xe   :  { %s33_s29 = sshll.u32 %s2916_s28, 4  ;;  %s34_s29 = int_to_ptr.vmem [resolvable:$true] %s33_s29 }
   0xf   :  { %s2897_s30 = scalar_lea.vmem %s34_s29, 128  ;;  %p2902_p6 = scmp.lt.s32.totalorder %s34_s29, %s34_s29 }
  0x10   :  { %p2898_p5 = scmp.ne.s32.totalorder %s34_s29, %s2897_s30  ;;  %p2903_p7 = scmp.lt.s32.totalorder %s2897_s30, %s2897_s30 }
  0x12   :  { %p2904_p8 = por %p2903_p7, %p2902_p6 }
  0x14   :  { %p2905_p9 = pnand %p2904_p8, %p2898_p5 }
  0x16   :  { %2908 = shalt.err (!%p2905_p9)
}
  0x17   :  { %36 = dma.hbm_to_vmem [thread:$0]  %s3303_s2, 128, %s34_s29, [#allocation5]  }
  0x18   :  { %2909 = dma.done.wait [#allocation3], 256  }
  0x19   :  { %2910 = vsyncadd [#allocation3], 4294967040 }
  0x1a   :  { %2911 = dma.done.wait [#allocation5], 128  }
  0x1b   :  { %2912 = vsyncadd [#allocation5], 4294967168  ;;  %vm56_vm0 = vcmask 64512   ;;  %v55_v0 = vld [vmem:[#allocation4] sm:$0xff]  ;;  %v49_v1 = vld [vmem:[%s3301_s0] sm:$0xff]  ;;  %v2917_v3 = vmov 28   ;;  %v266_v16 = vlaneseq }
  0x1c   :  { %v50_v2 = vld [vmem:[%s3301_s0 + $0x8] sm:$0xff]  ;;  %2571 = vmatprep.subr.mxu1 %v55_v0  ;;  %2573 = vmatprep.mubr.msk.f32.mxu1 %vm56_vm0, %v49_v1  ;;  %vm138_vm1 = vcmask 48128   ;;  %s2918_s0 = smov 104   ;;  %v3008_v26 = vld [vmem:[#allocation2 + $0x8] sm:$0xff]  ;;  %v3010_v27 = vld [vmem:[#allocation2] sm:$0xff]  ;;  %vm294_vm6 = vcmask 130048  }
  0x1d   :  { %2572 = vmatpush3.msra.mxu1 %v55_v0  ;;  %2716 = vset.pattern.permute.xlu1 %v2917_v3  ;;  %v267_v17 = vshrl.u32 %v266_v16, 7  ;;  %vm54_vm2 = vcmp.gt.f32.partialorder %v3008_v26, 0.0  ;;  %vm53_vm3 = vcmp.gt.f32.partialorder %v3010_v27, 0.0  ;;  %s2919_s2 = smov 122   ;;  %v2920_v39 = vmov 29   ;;  %s2921_s12 = smov 103  }
  0x1e   :  { %2574 = vmatmul.mubr.msk.f32.vlgmr.msra.gmra.mxu1 %vm56_vm0, %v50_v2  ;;  %s2922_s13 = smov 116   ;;  %s2924_s14 = smov 102   ;;  %vm1221_vm13 = vcmask 146432   ;;  %vm1218_vm14 = vcmask 97280   ;;  %vm1246_vm15 = vcmask 195584  }
  0x1f   :  { %v3005_v19 = vsub.s32 0, %v267_v17  ;;  %s2926_s15 = smov 110   ;;  %s2927_s16 = smov 101  }
  0x20   :  { %s2928_s17 = smov 12   ;;  %s2929_s18 = smov 6  }
  0x21   :  { %s2930_s23 = smov 18  }
  0xde   :  { %v2979_v4 = vpop.f32.mrf.mxu1 }
  0xdf   :  { %2576 = vmatprep.subr.msk.mxu1 %vm138_vm1, %v2979_v4  ;;  %2583 = vmatprep.subr.mxu0 %v2979_v4 }
  0xe0   :  { %v2984_v5 = vpop.f32.mrf.mxu1  ;;  %2577 = vmatpush3.xpose.msk.msra.mxu1 %vm138_vm1, %v2979_v4  ;;  %2584 = vmatpush3.msra.mxu0 %v2979_v4 }
  0xe1   :  { %259 = vperm.xlu1 %2716, %v2984_v5   ;;  %220 = vrot.lane.b32.xlu0 %v2984_v5, %s2918_s0 }
  0xe2   :  { %2578 = vmatprep.subr.msk.mxu1 %vm138_vm1, %v2984_v5  ;;  %2580 = vmatprep.mubr.msk.f32.mxu1 %vm138_vm1, %v2984_v5 }
  0xe3   :  { %2585 = vmatprep.subr.mxu0 %v2984_v5 }
  0xe4   :  { %2586 = vmatpush3.msra.mxu0 %v2984_v5  ;;  %2579 = vmatpush3.xpose.msk.msra.mxu1 %vm138_vm1, %v2984_v5 }
  0xe5   :  { %263 = vperm.xlu1 %2716, %v2979_v4   ;;  %222 = vrot.lane.b32.xlu0 %v2979_v4, %s2918_s0 }
  0xe7   :  { %2581 = vmatmul.mubr.msk.f32.vlgmr.msra.gmra.mxu1 %vm138_vm1, %v2979_v4 }
  0xe9   :  { %2717 = vset.pattern.permute.xlu1 %v2920_v39 }
 0x153   :  { %v221_v6 = vpop.permute.xlu0 %220 }
 0x154   :  { %226 = vxpose.xlu0.b32.start [1/2] (short) (narrow) %v221_v6, 8 }
 0x157   :  { %v223_v7 = vpop.permute.xlu0 %222 }
 0x158   :  { %227 = vxpose.xlu0.b32.end [2/2] (short) (narrow) %v223_v7, 8 }
 0x15c   :  { %v260_v18 = vpop.permute.xlu1 %259 }
 0x160   :  { %v264_v22 = vpop.permute.xlu1 %263 }
 0x1a7   :  { %v2582_v8 = vpop.f32.mrf.mxu1 }
 0x1a8   :  { %v2434_v10 = vmul.f32 -1.442695, %v2582_v8 }
 0x1a9   :  { %v211_v9 = vpop.f32.mrf.mxu1 }
 0x1aa   :  { %v2433_v11 = vmul.f32 -1.442695, %v211_v9  ;;  %2729 = vpow2.f32 %v2434_v10 }
 0x1ac   :  { %2731 = vpow2.f32 %v2433_v11 }
 0x1b7   :  { %v2730_v12 = vpop.eup %2729 }
 0x1b8   :  { %v279_v14 = vadd.f32 1.0, %v2730_v12 }
 0x1b9   :  { %v2732_v13 = vpop.eup %2731 }
 0x1ba   :  { %v278_v15 = vadd.f32 1.0, %v2732_v13  ;;  %2733 = vrcp.f32 %v279_v14 }
 0x1bc   :  { %2735 = vrcp.f32 %v278_v15 }
 0x1c7   :  { %v2734_v23 = vpop.eup %2733 }
 0x1c9   :  { %v2736_v28 = vpop.eup %2735 }
 0x1d0   :  { %v242_v20 = vpop.trf.xlu0 }
 0x1d1   :  { %v269_v21 = vrot.slane %v242_v20, %v3005_v19 }
 0x1d3   :  { %v270_v24 = vadd.f32 %v269_v21, %v260_v18  ;;  %v271_v25 = vadd.f32 %v269_v21, %v264_v22 }
 0x1d5   :  { %v284_v29 = vmul.f32 %v2736_v28, %v270_v24  ;;  %v285_v30 = vmul.f32 %v2734_v23, %v271_v25 }
 0x1d7   :  { %vm287_vm4 = vcmp.ge.f32.partialorder %v285_v30, 0.0  ;;  %v289_v31 = vmul.f32 0.2, %v285_v30  ;;  %vm286_vm5 = vcmp.ge.f32.partialorder %v284_v29, 0.0  ;;  %v288_v32 = vmul.f32 0.2, %v284_v29 }
 0x1d9   :  { %v291_v33 = vsel %vm287_vm4, %v285_v30, %v289_v31  ;;  %v290_v34 = vsel %vm286_vm5, %v284_v29, %v288_v32 }
 0x1da   :  { %v293_v35 = vsel %vm54_vm2, %v291_v33, -1e+30  ;;  %v292_v36 = vsel %vm53_vm3, %v290_v34, -1e+30  ;;  %v2923_v33 = vmov 30  }
 0x1db   :  { %v298_v37 = vsel %vm294_vm6, %v293_v35, -inf  ;;  %v295_v38 = vsel %vm294_vm6, %v292_v36, -inf }
 0x1dc   :  { %299 = vmax.xlane.f32.xlu0 %v298_v37  ;;  %296 = vmax.xlane.f32.xlu1 %v295_v38 }
 0x1ed   :  { %402 = vrot.lane.b32.xlu1 %v2979_v4, %s2919_s2 }
 0x265   :  { %v300_v40 = vpop.xlane.xlu0 %299  ;;  %v297_v41 = vpop.xlane.xlu1 %296 }
 0x266   :  { %v302_v42 = vsub.f32 %v293_v35, %v300_v40  ;;  %v301_v43 = vsub.f32 %v292_v36, %v297_v41 }
 0x268   :  { %v305_v44 = vmul.f32 1.442695, %v302_v42  ;;  %v303_v45 = vmul.f32 1.442695, %v301_v43 }
 0x269   :  { %v403_v46 = vpop.permute.xlu1 %402 }
 0x26a   :  { %2737 = vpow2.f32 %v305_v44  ;;  %2590 = vmatprep.subr.msk.mxu0 %vm138_vm1, %v403_v46  ;;  %2597 = vmatprep.subr.mxu1 %v403_v46 }
 0x26b   :  { %2598 = vmatpush3.msra.mxu1 %v403_v46  ;;  %2739 = vpow2.f32 %v303_v45 }
 0x277   :  { %v2738_v47 = vpop.eup %2737 }
 0x278   :  { %v310_v48 = vsel %vm294_vm6, %v2738_v47, 0.0  ;;  %v2740_v49 = vpop.eup %2739 }
 0x279   :  { %311 = vadd.xlane.f32.xlu1 %v310_v48  ;;  %v307_v50 = vsel %vm294_vm6, %v2740_v49, 0.0 }
 0x27d   :  { %308 = vadd.xlane.f32.xlu1 %v307_v50 }
 0x28e   :  { %400 = vrot.lane.b32.xlu1 %v2984_v5, %s2919_s2 }
 0x292   :  { %483 = vrot.lane.b32.xlu1 %v2984_v5, %s2921_s12 }
 0x296   :  { %485 = vrot.lane.b32.xlu1 %v2979_v4, %s2921_s12 }
 0x29a   :  { %522 = vperm.xlu1 %2717, %v2984_v5  }
 0x29e   :  { %526 = vperm.xlu1 %2717, %v2979_v4  }
 0x2a2   :  { %2718 = vset.pattern.permute.xlu1 %v2923_v33 }
 0x302   :  { %v312_v51 = vpop.xlane.xlu1 %311 }
 0x303   :  { %v314_v52 = vmax.f32 %v312_v51, 1e-30 }
 0x305   :  { %2741 = vrcp.f32 %v314_v52 }
 0x306   :  { %v309_v53 = vpop.xlane.xlu1 %308 }
 0x307   :  { %v313_v54 = vmax.f32 %v309_v53, 1e-30 }
 0x309   :  { %2743 = vrcp.f32 %v313_v54 }
 0x30a   :  { %v401_v55 = vpop.permute.xlu1 %400 }
 0x30b   :  { %2599 = vmatprep.subr.mxu1 %v401_v55 }
 0x30c   :  { %2600 = vmatpush3.msra.mxu1 %v401_v55 }
 0x30e   :  { %v484_v56 = vpop.permute.xlu1 %483 }
 0x30f   :  { %489 = vxpose.xlu0.b32.start [1/2] (short) (narrow) %v484_v56, 8 }
 0x312   :  { %v486_v57 = vpop.permute.xlu1 %485  ;;  %v2742_v58 = vpop.eup %2741 }
 0x313   :  { %490 = vxpose.xlu0.b32.end [2/2] (short) (narrow) %v486_v57, 8  ;;  %v318_v61 = vmul.f32 %v2742_v58, %v2738_v47 }
 0x316   :  { %v2744_v59 = vpop.eup %2743  ;;  %v523_v13 = vpop.permute.xlu1 %522 }
 0x317   :  { %v317_v60 = vmul.f32 %v2744_v59, %v2740_v49 }
 0x319   :  { %2587 = vmatprep.mubr.msk.f32.mxu0 %vm294_vm6, %v317_v60 }
 0x31a   :  { %2588 = vmatmul.mubr.msk.f32.vlgmr.msra.gmra.mxu0 %vm294_vm6, %v318_v61  ;;  %v527_v15 = vpop.permute.xlu1 %526 }
 0x31b   :  { %2591 = vmatpush3.xpose.msk.msra.mxu0 %vm138_vm1, %v403_v46  ;;  %2594 = vmatprep.mubr.msk.f32.mxu0 %vm138_vm1, %v401_v55 }
 0x31c   :  { %2592 = vmatprep.subr.msk.mxu0 %vm138_vm1, %v401_v55 }
 0x31f   :  { %2593 = vmatpush3.xpose.msk.msra.mxu0 %vm138_vm1, %v401_v55 }
 0x322   :  { %2595 = vmatmul.mubr.msk.f32.vlgmr.msra.gmra.mxu0 %vm138_vm1, %v403_v46 }
 0x33c   :  { %666 = vrot.lane.b32.xlu0 %v2979_v4, %s2922_s13 }
 0x38b   :  { %v505_v62 = vpop.trf.xlu0 }
 0x38c   :  { %v532_v14 = vrot.slane %v505_v62, %v3005_v19 }
 0x38e   :  { %v534_v16 = vadd.f32 %v532_v14, %v527_v15  ;;  %v533_v18 = vadd.f32 %v532_v14, %v523_v13 }
 0x3ae   :  { %v3043_v63 = vpop.permute.xlu0 %666 }
 0x3af   :  { %2604 = vmatprep.subr.msk.mxu1 %vm138_vm1, %v3043_v63  ;;  %2611 = vmatprep.subr.mxu0 %v3043_v63 }
 0x3b0   :  { %2612 = vmatpush3.msra.mxu0 %v3043_v63 }
 0x3da   :  { %v3049_v0 = vpop.f32.mrf.mxu0 }
 0x3dc   :  { %v3051_v1 = vpop.f32.mrf.mxu0 }
 0x3e2   :  { %v2596_v2 = vpop.f32.mrf.mxu0 }
 0x3e3   :  { %v2442_v6 = vmul.f32 -1.442695, %v2596_v2 }
 0x3e4   :  { %v474_v7 = vpop.f32.mrf.mxu0 }
 0x3e5   :  { %2745 = vpow2.f32 %v2442_v6  ;;  %v2441_v8 = vmul.f32 -1.442695, %v474_v7 }
 0x3e7   :  { %2747 = vpow2.f32 %v2441_v8 }
 0x3f2   :  { %v2746_v9 = vpop.eup %2745 }
 0x3f3   :  { %v542_v10 = vadd.f32 1.0, %v2746_v9 }
 0x3f4   :  { %v2748_v11 = vpop.eup %2747 }
 0x3f5   :  { %2749 = vrcp.f32 %v542_v10  ;;  %v541_v12 = vadd.f32 1.0, %v2748_v11 }
 0x3f7   :  { %2751 = vrcp.f32 %v541_v12 }
 0x402   :  { %v2750_v17 = vpop.eup %2749 }
 0x403   :  { %v548_v20 = vmul.f32 %v2750_v17, %v534_v16 }
 0x404   :  { %v2752_v21 = vpop.eup %2751 }
 0x405   :  { %v547_v22 = vmul.f32 %v2752_v21, %v533_v18  ;;  %v552_v23 = vmul.f32 0.2, %v548_v20  ;;  %vm550_vm7 = vcmp.ge.f32.partialorder %v548_v20, 0.0 }
 0x407   :  { %vm549_vm8 = vcmp.ge.f32.partialorder %v547_v22, 0.0  ;;  %v551_v24 = vmul.f32 0.2, %v547_v22  ;;  %v554_v28 = vsel %vm550_vm7, %v548_v20, %v552_v23 }
 0x408   :  { %v556_v31 = vsel %vm54_vm2, %v554_v28, -1e+30  ;;  %v2925_v28 = vmov 31  }
 0x409   :  { %v553_v25 = vsel %vm549_vm8, %v547_v22, %v551_v24  ;;  %v560_v32 = vsel %vm294_vm6, %v556_v31, -inf  ;;  %2719 = vset.pattern.permute.xlu0 %v2925_v28 }
 0x40a   :  { %v555_v29 = vsel %vm53_vm3, %v553_v25, -1e+30 }
 0x40b   :  { %v557_v30 = vsel %vm294_vm6, %v555_v29, -inf }
 0x40c   :  { %558 = vmax.xlane.f32.xlu1 %v557_v30 }
 0x410   :  { %561 = vmax.xlane.f32.xlu1 %v560_v32 }
 0x495   :  { %v559_v34 = vpop.xlane.xlu1 %558 }
 0x496   :  { %v563_v35 = vsub.f32 %v555_v29, %v559_v34 }
 0x498   :  { %v565_v38 = vmul.f32 1.442695, %v563_v35 }
 0x499   :  { %v562_v36 = vpop.xlane.xlu1 %561 }
 0x49a   :  { %v564_v37 = vsub.f32 %v556_v31, %v562_v36 }
 0x49c   :  { %v567_v40 = vmul.f32 1.442695, %v564_v37 }
 0x49e   :  { %2753 = vpow2.f32 %v567_v40 }
 0x49f   :  { %2755 = vpow2.f32 %v565_v38 }
 0x4ab   :  { %v2754_v41 = vpop.eup %2753 }
 0x4ac   :  { %v572_v42 = vsel %vm294_vm6, %v2754_v41, 0.0  ;;  %v2756_v43 = vpop.eup %2755 }
 0x4ad   :  { %573 = vadd.xlane.f32.xlu1 %v572_v42  ;;  %v569_v44 = vsel %vm294_vm6, %v2756_v43, 0.0 }
 0x4b1   :  { %570 = vadd.xlane.f32.xlu1 %v569_v44 }
 0x4c2   :  { %664 = vrot.lane.b32.xlu1 %v2984_v5, %s2922_s13 }
 0x4c6   :  { %747 = vrot.lane.b32.xlu1 %v2984_v5, %s2924_s14 }
 0x4ca   :  { %749 = vrot.lane.b32.xlu1 %v2979_v4, %s2924_s14 }
 0x4ce   :  { %786 = vperm.xlu1 %2718, %v2984_v5  }
 0x4d2   :  { %790 = vperm.xlu1 %2718, %v2979_v4  }
 0x536   :  { %v574_v45 = vpop.xlane.xlu1 %573 }
 0x537   :  { %v576_v46 = vmax.f32 %v574_v45, 1e-30 }
 0x539   :  { %2757 = vrcp.f32 %v576_v46 }
 0x53a   :  { %v571_v47 = vpop.xlane.xlu1 %570 }
 0x53b   :  { %v575_v48 = vmax.f32 %v571_v47, 1e-30 }
 0x53d   :  { %2759 = vrcp.f32 %v575_v48 }
 0x53e   :  { %v665_v49 = vpop.permute.xlu1 %664 }
 0x53f   :  { %2613 = vmatprep.subr.mxu0 %v665_v49 }
 0x540   :  { %2614 = vmatpush3.msra.mxu0 %v665_v49 }
 0x542   :  { %v748_v50 = vpop.permute.xlu1 %747 }
 0x543   :  { %753 = vxpose.xlu1.b32.start [1/2] (short) (narrow) %v748_v50, 8 }
 0x546   :  { %v750_v51 = vpop.permute.xlu1 %749  ;;  %v2758_v52 = vpop.eup %2757 }
 0x547   :  { %754 = vxpose.xlu1.b32.end [2/2] (short) (narrow) %v750_v51, 8  ;;  %v580_v55 = vmul.f32 %v2758_v52, %v2754_v41 }
 0x54a   :  { %v2760_v53 = vpop.eup %2759  ;;  %v787_v62 = vpop.permute.xlu1 %786 }
 0x54b   :  { %v579_v54 = vmul.f32 %v2760_v53, %v2756_v43 }
 0x54d   :  { %2601 = vmatprep.mubr.msk.f32.mxu1 %vm294_vm6, %v579_v54 }
 0x54e   :  { %2602 = vmatmul.mubr.msk.f32.vlgmr.msra.gmra.mxu1 %vm294_vm6, %v580_v55  ;;  %v791_v9 = vpop.permute.xlu1 %790 }
 0x54f   :  { %2605 = vmatpush3.xpose.msk.msra.mxu1 %vm138_vm1, %v3043_v63  ;;  %2608 = vmatprep.mubr.msk.f32.mxu1 %vm138_vm1, %v665_v49 }
 0x550   :  { %2606 = vmatprep.subr.msk.mxu1 %vm138_vm1, %v665_v49 }
 0x553   :  { %2607 = vmatpush3.xpose.msk.msra.mxu1 %vm138_vm1, %v665_v49 }
 0x556   :  { %2609 = vmatmul.mubr.msk.f32.vlgmr.msra.gmra.mxu1 %vm138_vm1, %v3043_v63 }
 0x565   :  { %2720 = vset.pattern.permute.xlu1 %v2925_v28 }
 0x5bf   :  { %v769_v10 = vpop.trf.xlu1 }
 0x5c0   :  { %v796_v63 = vrot.slane %v769_v10, %v3005_v19 }
 0x5c2   :  { %v798_v11 = vadd.f32 %v796_v63, %v791_v9  ;;  %v797_v13 = vadd.f32 %v796_v63, %v787_v62 }
 0x60e   :  { %v3080_v56 = vpop.f32.mrf.mxu1 }
 0x610   :  { %v3082_v57 = vpop.f32.mrf.mxu1 }
 0x616   :  { %v2610_v58 = vpop.f32.mrf.mxu1 }
 0x617   :  { %v2450_v59 = vmul.f32 -1.442695, %v2610_v58 }
 0x618   :  { %v738_v60 = vpop.f32.mrf.mxu1 }
 0x619   :  { %2761 = vpow2.f32 %v2450_v59  ;;  %v2449_v61 = vmul.f32 -1.442695, %v738_v60 }
 0x61b   :  { %2763 = vpow2.f32 %v2449_v61 }
 0x626   :  { %v2762_v2 = vpop.eup %2761 }
 0x627   :  { %v806_v6 = vadd.f32 1.0, %v2762_v2 }
 0x628   :  { %v2764_v7 = vpop.eup %2763 }
 0x629   :  { %2765 = vrcp.f32 %v806_v6  ;;  %v805_v8 = vadd.f32 1.0, %v2764_v7 }
 0x62b   :  { %2767 = vrcp.f32 %v805_v8 }
 0x636   :  { %v2766_v12 = vpop.eup %2765 }
 0x637   :  { %v812_v14 = vmul.f32 %v2766_v12, %v798_v11 }
 0x638   :  { %v2768_v15 = vpop.eup %2767 }
 0x639   :  { %v811_v16 = vmul.f32 %v2768_v15, %v797_v13  ;;  %v816_v17 = vmul.f32 0.2, %v812_v14  ;;  %vm814_vm9 = vcmp.ge.f32.partialorder %v812_v14, 0.0 }
 0x63b   :  { %vm813_vm10 = vcmp.ge.f32.partialorder %v811_v16, 0.0  ;;  %v815_v18 = vmul.f32 0.2, %v811_v16  ;;  %v818_v21 = vsel %vm814_vm9, %v812_v14, %v816_v17 }
 0x63c   :  { %v820_v24 = vsel %vm54_vm2, %v818_v21, -1e+30 }
 0x63d   :  { %v817_v20 = vsel %vm813_vm10, %v811_v16, %v815_v18  ;;  %v824_v25 = vsel %vm294_vm6, %v820_v24, -inf }
 0x63e   :  { %v819_v22 = vsel %vm53_vm3, %v817_v20, -1e+30 }
 0x63f   :  { %v821_v23 = vsel %vm294_vm6, %v819_v22, -inf }
 0x640   :  { %822 = vmax.xlane.f32.xlu0 %v821_v23 }
 0x644   :  { %825 = vmax.xlane.f32.xlu0 %v824_v25 }
 0x6c9   :  { %v823_v29 = vpop.xlane.xlu0 %822 }
 0x6ca   :  { %v827_v30 = vsub.f32 %v819_v22, %v823_v29 }
 0x6cc   :  { %v829_v31 = vmul.f32 1.442695, %v827_v30 }
 0x6cd   :  { %v826_v32 = vpop.xlane.xlu0 %825 }
 0x6ce   :  { %2769 = vpow2.f32 %v829_v31  ;;  %v828_v34 = vsub.f32 %v820_v24, %v826_v32 }
 0x6d0   :  { %v831_v35 = vmul.f32 1.442695, %v828_v34 }
 0x6d2   :  { %2771 = vpow2.f32 %v831_v35 }
 0x6db   :  { %v2770_v36 = vpop.eup %2769 }
 0x6dc   :  { %v833_v37 = vsel %vm294_vm6, %v2770_v36, 0.0 }
 0x6dd   :  { %834 = vadd.xlane.f32.xlu0 %v833_v37 }
 0x6df   :  { %v2772_v38 = vpop.eup %2771 }
 0x6e0   :  { %v836_v40 = vsel %vm294_vm6, %v2772_v38, 0.0 }
 0x6e1   :  { %837 = vadd.xlane.f32.xlu1 %v836_v40 }
 0x6f2   :  { %1054 = vperm.xlu1 %2720, %v2979_v4  }
 0x6f3   :  { %930 = vrot.lane.b32.xlu0 %v2979_v4, %s2926_s15 }
 0x6f6   :  { %2722 = vset.pattern.permute.xlu1 %v2920_v39 }
 0x6f7   :  { %928 = vrot.lane.b32.xlu0 %v2984_v5, %s2926_s15 }
 0x6fb   :  { %1011 = vrot.lane.b32.xlu0 %v2984_v5, %s2927_s16 }
 0x6ff   :  { %1013 = vrot.lane.b32.xlu0 %v2979_v4, %s2927_s16 }
 0x703   :  { %1050 = vperm.xlu0 %2719, %v2984_v5  }
 0x766   :  { %v835_v41 = vpop.xlane.xlu0 %834 }
 0x767   :  { %v839_v42 = vmax.f32 %v835_v41, 1e-30 }
 0x769   :  { %2773 = vrcp.f32 %v839_v42 }
 0x76a   :  { %v838_v43 = vpop.xlane.xlu1 %837  ;;  %v931_v44 = vpop.permute.xlu0 %930 }
 0x76b   :  { %v840_v45 = vmax.f32 %v838_v43, 1e-30  ;;  %2618 = vmatprep.subr.msk.mxu0 %vm138_vm1, %v931_v44  ;;  %2625 = vmatprep.subr.mxu1 %v931_v44 }
 0x76c   :  { %2626 = vmatpush3.msra.mxu1 %v931_v44 }
 0x76d   :  { %2775 = vrcp.f32 %v840_v45 }
 0x76e   :  { %v929_v46 = vpop.permute.xlu0 %928  ;;  %v1055_v8 = vpop.permute.xlu1 %1054 }
 0x76f   :  { %2627 = vmatprep.subr.mxu1 %v929_v46 }
 0x770   :  { %2628 = vmatpush3.msra.mxu1 %v929_v46 }
 0x772   :  { %v1012_v47 = vpop.permute.xlu0 %1011 }
 0x773   :  { %1017 = vxpose.xlu0.b32.start [1/2] (short) (narrow) %v1012_v47, 8  ;;  %v1243_v47 = vld [vmem:[%s3305_s4] sm:$0xff] }
 0x776   :  { %v2774_v48 = vpop.eup %2773  ;;  %v1014_v4 = vpop.permute.xlu0 %1013 }
 0x777   :  { %1018 = vxpose.xlu0.b32.end [2/2] (short) (narrow) %v1014_v4, 8  ;;  %v843_v5 = vmul.f32 %v2774_v48, %v2770_v36 }
 0x779   :  { %2615 = vmatprep.mubr.msk.f32.mxu0 %vm294_vm6, %v843_v5 }
 0x77a   :  { %v2776_v49 = vpop.eup %2775 }
 0x77b   :  { %v844_v50 = vmul.f32 %v2776_v49, %v2772_v38 }
 0x77d   :  { %2616 = vmatmul.mubr.msk.f32.vlgmr.msra.gmra.mxu0 %vm294_vm6, %v844_v50  ;;  %v2461_v50 = vld [vmem:[%s3304_s3] ss:$0 sm:$0xff] }
 0x77e   :  { %2619 = vmatpush3.xpose.msk.msra.mxu0 %vm138_vm1, %v931_v44  ;;  %2622 = vmatprep.mubr.msk.f32.mxu0 %vm138_vm1, %v929_v46  ;;  %v1051_v2 = vpop.permute.xlu0 %1050 }
 0x77f   :  { %2620 = vmatprep.subr.msk.mxu0 %vm138_vm1, %v929_v46 }
 0x782   :  { %2621 = vmatpush3.xpose.msk.msra.mxu0 %vm138_vm1, %v929_v46 }
 0x785   :  { %2623 = vmatmul.mubr.msk.f32.vlgmr.msra.gmra.mxu0 %vm138_vm1, %v931_v44 }
 0x7a0   :  { %2721 = vset.pattern.permute.xlu0 %v2920_v39 }
 0x7ef   :  { %v1033_v6 = vpop.trf.xlu0 }
 0x7f0   :  { %v1060_v7 = vrot.slane %v1033_v6, %v3005_v19 }
 0x7f2   :  { %v1062_v39 = vadd.f32 %v1060_v7, %v1055_v8  ;;  %v1061_v10 = vadd.f32 %v1060_v7, %v1051_v2 }
 0x83d   :  { %v2617_v51 = vpop.f32.mrf.mxu0 }
 0x83f   :  { %v919_v52 = vpop.f32.mrf.mxu0 }
 0x845   :  { %v2624_v53 = vpop.f32.mrf.mxu0 }
 0x846   :  { %v2458_v54 = vmul.f32 -1.442695, %v2624_v53 }
 0x847   :  { %v1002_v55 = vpop.f32.mrf.mxu0 }
 0x848   :  { %2777 = vpow2.f32 %v2458_v54  ;;  %v2457_v58 = vmul.f32 -1.442695, %v1002_v55 }
 0x84a   :  { %2779 = vpow2.f32 %v2457_v58 }
 0x855   :  { %v2778_v59 = vpop.eup %2777 }
 0x856   :  { %v1070_v60 = vadd.f32 1.0, %v2778_v59 }
 0x857   :  { %v2780_v61 = vpop.eup %2779 }
 0x858   :  { %2781 = vrcp.f32 %v1070_v60  ;;  %v1069_v62 = vadd.f32 1.0, %v2780_v61 }
 0x85a   :  { %2783 = vrcp.f32 %v1069_v62 }
 0x865   :  { %v2782_v9 = vpop.eup %2781 }
 0x866   :  { %v1076_v63 = vmul.f32 %v2782_v9, %v1062_v39 }
 0x867   :  { %v2784_v11 = vpop.eup %2783 }
 0x868   :  { %vm1078_vm11 = vcmp.ge.f32.partialorder %v1076_v63, 0.0  ;;  %v1080_v12 = vmul.f32 0.2, %v1076_v63  ;;  %v1075_v13 = vmul.f32 %v2784_v11, %v1061_v10 }
 0x86a   :  { %v1082_v14 = vsel %vm1078_vm11, %v1076_v63, %v1080_v12  ;;  %vm1077_vm12 = vcmp.ge.f32.partialorder %v1075_v13, 0.0  ;;  %v1079_v15 = vmul.f32 0.2, %v1075_v13 }
 0x86b   :  { %v1084_v16 = vsel %vm54_vm2, %v1082_v14, -1e+30 }
 0x86c   :  { %v1088_v17 = vsel %vm294_vm6, %v1084_v16, -inf  ;;  %v1081_v18 = vsel %vm1077_vm12, %v1075_v13, %v1079_v15 }
 0x86d   :  { %1089 = vmax.xlane.f32.xlu0 %v1088_v17  ;;  %v1083_v20 = vsel %vm53_vm3, %v1081_v18, -1e+30 }
 0x86e   :  { %v1085_v21 = vsel %vm294_vm6, %v1083_v20, -inf }
 0x86f   :  { %1086 = vmax.xlane.f32.xlu1 %v1085_v21 }
 0x883   :  { %1204 = vrot.lane.b32.xlu0 %v2617_v51, %s2928_s17 }
 0x8f6   :  { %v1090_v22 = vpop.xlane.xlu0 %1089 }
 0x8f7   :  { %v1092_v23 = vsub.f32 %v1084_v16, %v1090_v22 }
 0x8f8   :  { %v1087_v24 = vpop.xlane.xlu1 %1086 }
 0x8f9   :  { %v1091_v25 = vsub.f32 %v1083_v20, %v1087_v24  ;;  %v1095_v29 = vmul.f32 1.442695, %v1092_v23 }
 0x8fa   :  { %v1205_v58 = vpop.permute.xlu0 %1204 }
 0x8fb   :  { %v1093_v30 = vmul.f32 1.442695, %v1091_v25 }
 0x8fd   :  { %2785 = vpow2.f32 %v1093_v30 }
 0x8fe   :  { %2787 = vpow2.f32 %v1095_v29 }
 0x90a   :  { %v2786_v31 = vpop.eup %2785 }
 0x90b   :  { %v1097_v32 = vsel %vm294_vm6, %v2786_v31, 0.0  ;;  %v2788_v34 = vpop.eup %2787 }
 0x90c   :  { %1098 = vadd.xlane.f32.xlu1 %v1097_v32  ;;  %v1100_v35 = vsel %vm294_vm6, %v2788_v34, 0.0 }
 0x910   :  { %1101 = vadd.xlane.f32.xlu1 %v1100_v35 }
 0x921   :  { %1194 = vrot.lane.b32.xlu1 %v3082_v57, %s2929_s18  ;;  %v1245_v57 = vld [vmem:[%s3305_s4 + $0x10] sm:$0xff] }
 0x922   :  { %2632 = vmatprep.subr.mxu1 %v1245_v57 }
 0x925   :  { %1196 = vrot.lane.b32.xlu1 %v3080_v56, %s2929_s18  ;;  %v1244_v56 = vld [vmem:[%s3305_s4 + $0x8] sm:$0xff] }
 0x929   :  { %1202 = vrot.lane.b32.xlu1 %v919_v52, %s2928_s17 }
 0x995   :  { %v1099_v36 = vpop.xlane.xlu1 %1098 }
 0x996   :  { %v1103_v37 = vmax.f32 %v1099_v36, 1e-30 }
 0x998   :  { %2789 = vrcp.f32 %v1103_v37 }
 0x999   :  { %v1102_v38 = vpop.xlane.xlu1 %1101 }
 0x99a   :  { %v1104_v40 = vmax.f32 %v1102_v38, 1e-30 }
 0x99c   :  { %2791 = vrcp.f32 %v1104_v40 }
 0x99d   :  { %v1195_v48 = vpop.permute.xlu1 %1194 }
 0x99e   :  { %v1216_v49 = vsel %vm138_vm1, %v3051_v1, %v1195_v48 }
 0x9a1   :  { %v1197_v4 = vpop.permute.xlu1 %1196 }
 0x9a2   :  { %v1217_v53 = vsel %vm138_vm1, %v3049_v0, %v1197_v4 }
 0x9a3   :  { %v1220_v60 = vsel %vm1218_vm14, %v1217_v53, %v1205_v58 }
 0x9a5   :  { %v2790_v41 = vpop.eup %2789  ;;  %v1203_v5 = vpop.permute.xlu1 %1202 }
 0x9a6   :  { %v1107_v42 = vmul.f32 %v2790_v41, %v2786_v31  ;;  %v1219_v51 = vsel %vm1218_vm14, %v1216_v49, %v1203_v5 }
 0x9a8   :  { %2629 = vmatprep.mubr.msk.f32.mxu1 %vm294_vm6, %v1107_v42 }
 0x9a9   :  { %v2792_v43 = vpop.eup %2791 }
 0x9aa   :  { %v1108_v44 = vmul.f32 %v2792_v43, %v2788_v34 }
 0x9ac   :  { %2630 = vmatmul.mubr.msk.f32.vlgmr.msra.gmra.mxu1 %vm294_vm6, %v1108_v44 }
 0x9ad   :  { %2633 = vmatpush3.msra.mxu1 %v1245_v57 }
 0x9ae   :  { %2634 = vmatprep.subr.mxu1 %v1244_v56 }
 0x9af   :  { %2635 = vmatpush3.msra.mxu1 %v1244_v56 }
 0x9b0   :  { %2636 = vmatprep.subr.mxu1 %v1243_v47 }
 0x9b1   :  { %2637 = vmatpush3.msra.mxu1 %v1243_v47 }
 0xa6c   :  { %v2631_v45 = vpop.f32.mrf.mxu1 }
 0xa6e   :  { %v1183_v46 = vpop.f32.mrf.mxu1 }
 0xa6f   :  { %1210 = vrot.lane.b32.xlu1 %v1183_v46, %s2930_s23 }
 0xa73   :  { %1212 = vrot.lane.b32.xlu1 %v2631_v45, %s2930_s23 }
 0xae1   :  { %v1211_v52 = vpop.permute.xlu1 %1210 }
 0xae2   :  { %v1222_v54 = vsel %vm1221_vm13, %v1219_v51, %v1211_v52 }
 0xae3   :  { %v1231_v55 = vadd.f32 %v2461_v50, %v1222_v54 }
 0xae5   :  { %v1235_v59 = vmul.f32 1.442695, %v1231_v55  ;;  %v1213_v61 = vpop.permute.xlu1 %1212  ;;  %vm1233_vm0 = vcmp.gt.f32.partialorder %v1231_v55, 0.0 }
 0xae6   :  { %v1223_v62 = vsel %vm1221_vm13, %v1220_v60, %v1213_v61 }
 0xae7   :  { %2793 = vpow2.f32 %v1235_v59  ;;  %v1232_v2 = vadd.f32 %v2461_v50, %v1223_v62 }
 0xae9   :  { %v1237_v1 = vmul.f32 1.442695, %v1232_v2  ;;  %vm1234_vm4 = vcmp.gt.f32.partialorder %v1232_v2, 0.0 }
 0xaeb   :  { %2795 = vpow2.f32 %v1237_v1 }
 0xaf4   :  { %v2794_v6 = vpop.eup %2793 }
 0xaf5   :  { %v2462_v7 = vadd.f32 -1.0, %v2794_v6 }
 0xaf7   :  { %v1241_v8 = vsel %vm1233_vm0, %v1231_v55, %v2462_v7 }
 0xaf8   :  { %v2796_v39 = vpop.eup %2795  ;;  %2638 = vmatprep.mubr.msk.f32.mxu1 %vm1246_vm15, %v1241_v8 }
 0xaf9   :  { %v2463_v9 = vadd.f32 -1.0, %v2796_v39 }
 0xafb   :  { %v1242_v0 = vsel %vm1234_vm4, %v1232_v2, %v2463_v9 }
 0xafc   :  { %2639 = vmatmul.mubr.msk.f32.vlgmr.msra.gmra.mxu1 %vm1246_vm15, %v1242_v0 }
 0xbbc   :  { %v3144_v10 = vpop.f32.mrf.mxu1 }
 0xbbd   :  { %1592 = vrot.lane.b32.xlu0 %v3144_v10, %s2921_s12  ;;  %1509 = vrot.lane.b32.xlu1 %v3144_v10, %s2919_s2 }
 0xbbe   :  { %2641 = vmatprep.subr.msk.mxu0 %vm138_vm1, %v3144_v10  ;;  %v3152_v63 = vpop.f32.mrf.mxu1 }
 0xbbf   :  { %2642 = vmatpush3.xpose.msk.msra.mxu0 %vm138_vm1, %v3144_v10  ;;  %2645 = vmatprep.mubr.msk.f32.mxu0 %vm138_vm1, %v3152_v63 }
 0xbc0   :  { %2643 = vmatprep.subr.msk.mxu0 %vm138_vm1, %v3152_v63 }
 0xbc1   :  { %1633 = vperm.xlu0 %2721, %v3144_v10   ;;  %1507 = vrot.lane.b32.xlu1 %v3152_v63, %s2919_s2 }
 0xbc3   :  { %2644 = vmatpush3.xpose.msk.msra.mxu0 %vm138_vm1, %v3152_v63 }
 0xbc5   :  { %1590 = vrot.lane.b32.xlu1 %v3152_v63, %s2921_s12  ;;  %2723 = vset.pattern.permute.xlu0 %v2923_v33 }
 0xbc6   :  { %2646 = vmatmul.mubr.msk.f32.vlgmr.msra.gmra.mxu0 %vm138_vm1, %v3144_v10 }
 0xbc9   :  { %1629 = vperm.xlu1 %2722, %v3152_v63  }
 0xc2f   :  { %v1510_v11 = vpop.permute.xlu1 %1509  ;;  %v1593_v14 = vpop.permute.xlu0 %1592 }
 0xc30   :  { %2648 = vmatprep.subr.msk.mxu1 %vm138_vm1, %v1510_v11  ;;  %2655 = vmatprep.subr.mxu0 %v1510_v11 }
 0xc31   :  { %2649 = vmatpush3.xpose.msk.msra.mxu1 %vm138_vm1, %v1510_v11  ;;  %2656 = vmatpush3.msra.mxu0 %v1510_v11 }
 0xc33   :  { %v1508_v12 = vpop.permute.xlu1 %1507 }
 0xc34   :  { %2650 = vmatprep.subr.msk.mxu1 %vm138_vm1, %v1508_v12  ;;  %2652 = vmatprep.mubr.msk.f32.mxu1 %vm138_vm1, %v1508_v12 }
 0xc35   :  { %2657 = vmatprep.subr.mxu0 %v1508_v12  ;;  %2651 = vmatpush3.xpose.msk.msra.mxu1 %vm138_vm1, %v1508_v12 }
 0xc36   :  { %2658 = vmatpush3.msra.mxu0 %v1508_v12 }
 0xc37   :  { %v1591_v13 = vpop.permute.xlu1 %1590 }
 0xc38   :  { %2653 = vmatmul.mubr.msk.f32.vlgmr.msra.gmra.mxu1 %vm138_vm1, %v1510_v11  ;;  %1596 = vxpose.xlu1.b32.start [1/2] (short) (narrow) %v1591_v13, 8 }
 0xc3c   :  { %1597 = vxpose.xlu1.b32.end [2/2] (short) (narrow) %v1593_v14, 8  ;;  %v1634_v30 = vpop.permute.xlu0 %1633 }
 0xc44   :  { %v1630_v24 = vpop.permute.xlu1 %1629 }
 0xc5a   :  { %2724 = vset.pattern.permute.xlu1 %v2923_v33 }
 0xc86   :  { %v3207_v7 = vpop.f32.mrf.mxu0 }
 0xc88   :  { %v3209_v8 = vpop.f32.mrf.mxu0 }
 0xcb4   :  { %v1612_v25 = vpop.trf.xlu1 }
 0xcb5   :  { %v1639_v29 = vrot.slane %v1612_v25, %v3005_v19 }
 0xcb7   :  { %v1641_v31 = vadd.f32 %v1639_v29, %v1634_v30  ;;  %v1640_v33 = vadd.f32 %v1639_v29, %v1630_v24 }
 0xcf8   :  { %v2654_v15 = vpop.f32.mrf.mxu1 }
 0xcf9   :  { %v2477_v16 = vmul.f32 -1.442695, %v2654_v15 }
 0xcfa   :  { %v1581_v17 = vpop.f32.mrf.mxu1 }
 0xcfb   :  { %2797 = vpow2.f32 %v2477_v16  ;;  %v2476_v18 = vmul.f32 -1.442695, %v1581_v17 }
 0xcfd   :  { %2799 = vpow2.f32 %v2476_v18 }
 0xd08   :  { %v2798_v20 = vpop.eup %2797 }
 0xd09   :  { %v1649_v21 = vadd.f32 1.0, %v2798_v20 }
 0xd0a   :  { %v2800_v22 = vpop.eup %2799 }
 0xd0b   :  { %2801 = vrcp.f32 %v1649_v21  ;;  %v1648_v23 = vadd.f32 1.0, %v2800_v22 }
 0xd0d   :  { %2803 = vrcp.f32 %v1648_v23 }
 0xd18   :  { %v2802_v32 = vpop.eup %2801 }
 0xd19   :  { %v1655_v34 = vmul.f32 %v2802_v32, %v1641_v31 }
 0xd1a   :  { %v2804_v35 = vpop.eup %2803 }
 0xd1b   :  { %v1654_v36 = vmul.f32 %v2804_v35, %v1640_v33  ;;  %v1659_v37 = vmul.f32 0.2, %v1655_v34  ;;  %vm1657_vm5 = vcmp.ge.f32.partialorder %v1655_v34, 0.0 }
 0xd1d   :  { %vm1656_vm7 = vcmp.ge.f32.partialorder %v1654_v36, 0.0  ;;  %v1658_v38 = vmul.f32 0.2, %v1654_v36  ;;  %v1661_v41 = vsel %vm1657_vm5, %v1655_v34, %v1659_v37 }
 0xd1e   :  { %v1663_v44 = vsel %vm54_vm2, %v1661_v41, -1e+30 }
 0xd1f   :  { %v1660_v40 = vsel %vm1656_vm7, %v1654_v36, %v1658_v38  ;;  %v1667_v57 = vsel %vm294_vm6, %v1663_v44, -inf }
 0xd20   :  { %v1662_v42 = vsel %vm53_vm3, %v1660_v40, -1e+30 }
 0xd21   :  { %v1664_v43 = vsel %vm294_vm6, %v1662_v42, -inf }
 0xd22   :  { %1665 = vmax.xlane.f32.xlu0 %v1664_v43 }
 0xd26   :  { %1668 = vmax.xlane.f32.xlu0 %v1667_v57 }
 0xdab   :  { %v1666_v56 = vpop.xlane.xlu0 %1665 }
 0xdac   :  { %v1670_v45 = vsub.f32 %v1662_v42, %v1666_v56 }
 0xdae   :  { %v1672_v46 = vmul.f32 1.442695, %v1670_v45 }
 0xdaf   :  { %v1669_v47 = vpop.xlane.xlu0 %1668 }
 0xdb0   :  { %2805 = vpow2.f32 %v1672_v46  ;;  %v1671_v48 = vsub.f32 %v1663_v44, %v1669_v47 }
 0xdb2   :  { %v1674_v4 = vmul.f32 1.442695, %v1671_v48 }
 0xdb4   :  { %2807 = vpow2.f32 %v1674_v4 }
 0xdbd   :  { %v2806_v5 = vpop.eup %2805 }
 0xdbe   :  { %v1676_v49 = vsel %vm294_vm6, %v2806_v5, 0.0 }
 0xdbf   :  { %1677 = vadd.xlane.f32.xlu0 %v1676_v49 }
 0xdc1   :  { %v2808_v50 = vpop.eup %2807 }
 0xdc2   :  { %v1679_v51 = vsel %vm294_vm6, %v2808_v50, 0.0 }
 0xdc3   :  { %1680 = vadd.xlane.f32.xlu1 %v1679_v51 }
 0xdd4   :  { %1897 = vperm.xlu1 %2724, %v3144_v10  }
 0xdd5   :  { %1773 = vrot.lane.b32.xlu0 %v3144_v10, %s2922_s13 }
 0xdd8   :  { %2725 = vset.pattern.permute.xlu1 %v2925_v28 }
 0xdd9   :  { %1771 = vrot.lane.b32.xlu0 %v3152_v63, %s2922_s13 }
 0xddd   :  { %1854 = vrot.lane.b32.xlu0 %v3152_v63, %s2924_s14 }
 0xde1   :  { %1856 = vrot.lane.b32.xlu0 %v3144_v10, %s2924_s14 }
 0xde5   :  { %1893 = vperm.xlu0 %2723, %v3152_v63  }
 0xe48   :  { %v1678_v52 = vpop.xlane.xlu0 %1677 }
 0xe49   :  { %v1682_v53 = vmax.f32 %v1678_v52, 1e-30 }
 0xe4b   :  { %2809 = vrcp.f32 %v1682_v53 }
 0xe4c   :  { %v1681_v54 = vpop.xlane.xlu1 %1680  ;;  %v1774_v55 = vpop.permute.xlu0 %1773 }
 0xe4d   :  { %v1683_v58 = vmax.f32 %v1681_v54, 1e-30  ;;  %2662 = vmatprep.subr.msk.mxu0 %vm138_vm1, %v1774_v55  ;;  %2669 = vmatprep.subr.mxu1 %v1774_v55 }
 0xe4e   :  { %2670 = vmatpush3.msra.mxu1 %v1774_v55 }
 0xe4f   :  { %2811 = vrcp.f32 %v1683_v58 }
 0xe50   :  { %v1772_v59 = vpop.permute.xlu0 %1771  ;;  %v1898_v22 = vpop.permute.xlu1 %1897 }
 0xe51   :  { %2671 = vmatprep.subr.mxu1 %v1772_v59 }
 0xe52   :  { %2672 = vmatpush3.msra.mxu1 %v1772_v59 }
 0xe54   :  { %v1855_v60 = vpop.permute.xlu0 %1854 }
 0xe55   :  { %1860 = vxpose.xlu0.b32.start [1/2] (short) (narrow) %v1855_v60, 8 }
 0xe58   :  { %v2810_v61 = vpop.eup %2809  ;;  %v1857_v62 = vpop.permute.xlu0 %1856 }
 0xe59   :  { %1861 = vxpose.xlu0.b32.end [2/2] (short) (narrow) %v1857_v62, 8  ;;  %v1686_v2 = vmul.f32 %v2810_v61, %v2806_v5  ;;  %v2470_v62 = vmul.f32 -1.442695, %v3209_v8 }
 0xe5b   :  { %2659 = vmatprep.mubr.msk.f32.mxu0 %vm294_vm6, %v1686_v2  ;;  %v2471_v2 = vmul.f32 -1.442695, %v3207_v7 }
 0xe5c   :  { %v2812_v1 = vpop.eup %2811 }
 0xe5d   :  { %v1687_v6 = vmul.f32 %v2812_v1, %v2808_v50 }
 0xe5f   :  { %2660 = vmatmul.mubr.msk.f32.vlgmr.msra.gmra.mxu0 %vm294_vm6, %v1687_v6 }
 0xe60   :  { %2663 = vmatpush3.xpose.msk.msra.mxu0 %vm138_vm1, %v1774_v55  ;;  %2666 = vmatprep.mubr.msk.f32.mxu0 %vm138_vm1, %v1772_v59  ;;  %v1894_v18 = vpop.permute.xlu0 %1893 }
 0xe61   :  { %2664 = vmatprep.subr.msk.mxu0 %vm138_vm1, %v1772_v59 }
 0xe64   :  { %2665 = vmatpush3.xpose.msk.msra.mxu0 %vm138_vm1, %v1772_v59 }
 0xe67   :  { %2667 = vmatmul.mubr.msk.f32.vlgmr.msra.gmra.mxu0 %vm138_vm1, %v1774_v55 }
 0xe82   :  { %2727 = vset.pattern.permute.xlu0 %v2917_v3 }
 0xed1   :  { %v1876_v20 = vpop.trf.xlu0 }
 0xed2   :  { %v1903_v21 = vrot.slane %v1876_v20, %v3005_v19 }
 0xed4   :  { %v1905_v23 = vadd.f32 %v1903_v21, %v1898_v22  ;;  %v1904_v25 = vadd.f32 %v1903_v21, %v1894_v18 }
 0xf1f   :  { %v3211_v39 = vpop.f32.mrf.mxu0 }
 0xf21   :  { %v3213_v9 = vpop.f32.mrf.mxu0 }
 0xf27   :  { %v2668_v0 = vpop.f32.mrf.mxu0 }
 0xf28   :  { %v2485_v11 = vmul.f32 -1.442695, %v2668_v0 }
 0xf29   :  { %v1845_v12 = vpop.f32.mrf.mxu0 }
 0xf2a   :  { %2813 = vpow2.f32 %v2485_v11  ;;  %v2484_v13 = vmul.f32 -1.442695, %v1845_v12 }
 0xf2c   :  { %2815 = vpow2.f32 %v2484_v13 }
 0xf37   :  { %v2814_v14 = vpop.eup %2813 }
 0xf38   :  { %v1913_v15 = vadd.f32 1.0, %v2814_v14 }
 0xf39   :  { %v2816_v16 = vpop.eup %2815 }
 0xf3a   :  { %2817 = vrcp.f32 %v1913_v15  ;;  %v1912_v17 = vadd.f32 1.0, %v2816_v16 }
 0xf3c   :  { %2819 = vrcp.f32 %v1912_v17 }
 0xf47   :  { %v2818_v24 = vpop.eup %2817 }
 0xf48   :  { %v1919_v29 = vmul.f32 %v2818_v24, %v1905_v23 }
 0xf49   :  { %v2820_v30 = vpop.eup %2819 }
 0xf4a   :  { %vm1921_vm8 = vcmp.ge.f32.partialorder %v1919_v29, 0.0  ;;  %v1923_v31 = vmul.f32 0.2, %v1919_v29  ;;  %v1918_v32 = vmul.f32 %v2820_v30, %v1904_v25 }
 0xf4c   :  { %v1925_v33 = vsel %vm1921_vm8, %v1919_v29, %v1923_v31  ;;  %vm1920_vm9 = vcmp.ge.f32.partialorder %v1918_v32, 0.0  ;;  %v1922_v34 = vmul.f32 0.2, %v1918_v32 }
 0xf4d   :  { %v1927_v35 = vsel %vm54_vm2, %v1925_v33, -1e+30 }
 0xf4e   :  { %v1931_v36 = vsel %vm294_vm6, %v1927_v35, -inf  ;;  %v1924_v37 = vsel %vm1920_vm9, %v1918_v32, %v1922_v34 }
 0xf4f   :  { %1932 = vmax.xlane.f32.xlu0 %v1931_v36  ;;  %v1926_v38 = vsel %vm53_vm3, %v1924_v37, -1e+30 }
 0xf50   :  { %v1928_v40 = vsel %vm294_vm6, %v1926_v38, -inf }
 0xf51   :  { %1929 = vmax.xlane.f32.xlu1 %v1928_v40 }
 0xf62   :  { %2037 = vrot.lane.b32.xlu1 %v3144_v10, %s2926_s15 }
 0xf65   :  { %2120 = vrot.lane.b32.xlu0 %v3144_v10, %s2927_s16 }
 0xf69   :  { %1452 = vperm.xlu0 %2727, %v3144_v10  }
 0xfd8   :  { %v1933_v41 = vpop.xlane.xlu0 %1932 }
 0xfd9   :  { %v1935_v42 = vsub.f32 %v1927_v35, %v1933_v41 }
 0xfda   :  { %v1930_v43 = vpop.xlane.xlu1 %1929 }
 0xfdb   :  { %v1938_v44 = vmul.f32 1.442695, %v1935_v42  ;;  %v1934_v57 = vsub.f32 %v1926_v38, %v1930_v43 }
 0xfdc   :  { %v2121_v54 = vpop.permute.xlu0 %2120 }
 0xfdd   :  { %2821 = vpow2.f32 %v1938_v44  ;;  %v1936_v56 = vmul.f32 1.442695, %v1934_v57 }
 0xfde   :  { %v2038_v45 = vpop.permute.xlu1 %2037 }
 0xfdf   :  { %2823 = vpow2.f32 %v1936_v56  ;;  %2676 = vmatprep.subr.msk.mxu1 %vm138_vm1, %v2038_v45  ;;  %2683 = vmatprep.subr.mxu0 %v2038_v45 }
 0xfe0   :  { %2684 = vmatpush3.msra.mxu0 %v2038_v45 }
 0xfe4   :  { %v1453_v8 = vpop.permute.xlu0 %1452 }
 0xfea   :  { %v2822_v46 = vpop.eup %2821 }
 0xfeb   :  { %v1943_v47 = vsel %vm294_vm6, %v2822_v46, 0.0 }
 0xfec   :  { %v2824_v48 = vpop.eup %2823  ;;  %1944 = vadd.xlane.f32.xlu1 %v1943_v47 }
 0xfed   :  { %v1940_v4 = vsel %vm294_vm6, %v2824_v48, 0.0 }
 0xff0   :  { %1941 = vadd.xlane.f32.xlu1 %v1940_v4 }
0x1001   :  { %2035 = vrot.lane.b32.xlu1 %v3152_v63, %s2926_s15 }
0x1005   :  { %2118 = vrot.lane.b32.xlu1 %v3152_v63, %s2927_s16 }
0x1009   :  { %1409 = vrot.lane.b32.xlu1 %v3152_v63, %s2918_s0 }
0x100d   :  { %1411 = vrot.lane.b32.xlu1 %v3144_v10, %s2918_s0 }
0x1011   :  { %2157 = vperm.xlu1 %2725, %v3152_v63  }
0x1015   :  { %2161 = vperm.xlu1 %2725, %v3144_v10  }
0x1019   :  { %2726 = vset.pattern.permute.xlu1 %v2917_v3 }
0x101a   :  { %1448 = vperm.xlu1 %2726, %v3152_v63  }
0x1075   :  { %v1945_v5 = vpop.xlane.xlu1 %1944 }
0x1076   :  { %v1947_v49 = vmax.f32 %v1945_v5, 1e-30 }
0x1078   :  { %2825 = vrcp.f32 %v1947_v49 }
0x1079   :  { %v1942_v50 = vpop.xlane.xlu1 %1941 }
0x107a   :  { %v1946_v51 = vmax.f32 %v1942_v50, 1e-30 }
0x107c   :  { %2827 = vrcp.f32 %v1946_v51 }
0x107d   :  { %v2036_v52 = vpop.permute.xlu1 %2035  ;;  %2829 = vpow2.f32 %v2470_v62 }
0x107e   :  { %2685 = vmatprep.subr.mxu0 %v2036_v52  ;;  %2831 = vpow2.f32 %v2471_v2 }
0x107f   :  { %2686 = vmatpush3.msra.mxu0 %v2036_v52 }
0x1080   :  { %2690 = vmatprep.subr.mxu0 %v3144_v10 }
0x1081   :  { %v2119_v53 = vpop.permute.xlu1 %2118 }
0x1082   :  { %2124 = vxpose.xlu1.b32.start [1/2] (short) (narrow) %v2119_v53, 8 }
0x1085   :  { %v1410_v55 = vpop.permute.xlu1 %1409  ;;  %v2826_v3 = vpop.eup %2825 }
0x1086   :  { %2125 = vxpose.xlu1.b32.end [2/2] (short) (narrow) %v2121_v54, 8  ;;  %1415 = vxpose.xlu0.b32.start [1/2] (short) (narrow) %v1410_v55, 8  ;;  %v1951_v61 = vmul.f32 %v2826_v3, %v2822_v46 }
0x1089   :  { %v2828_v58 = vpop.eup %2827  ;;  %v1412_v59 = vpop.permute.xlu1 %1411 }
0x108a   :  { %1416 = vxpose.xlu0.b32.end [2/2] (short) (narrow) %v1412_v59, 8  ;;  %v1950_v60 = vmul.f32 %v2828_v58, %v2824_v48  ;;  %v2830_v14 = vpop.eup %2829 }
0x108b   :  { %v2832_v16 = vpop.eup %2831 }
0x108c   :  { %2673 = vmatprep.mubr.msk.f32.mxu1 %vm294_vm6, %v1950_v60  ;;  %v1468_v17 = vadd.f32 1.0, %v2832_v16 }
0x108d   :  { %2674 = vmatmul.mubr.msk.f32.vlgmr.msra.gmra.mxu1 %vm294_vm6, %v1951_v61  ;;  %v2158_v15 = vpop.permute.xlu1 %2157 }
0x108e   :  { %2677 = vmatpush3.xpose.msk.msra.mxu1 %vm138_vm1, %v2038_v45  ;;  %2680 = vmatprep.mubr.msk.f32.mxu1 %vm138_vm1, %v2036_v52 }
0x108f   :  { %2678 = vmatprep.subr.msk.mxu1 %vm138_vm1, %v2036_v52 }
0x1091   :  { %v2162_v18 = vpop.permute.xlu1 %2161 }
0x1092   :  { %2679 = vmatpush3.xpose.msk.msra.mxu1 %vm138_vm1, %v2036_v52 }
0x1095   :  { %2681 = vmatmul.mubr.msk.f32.vlgmr.msra.gmra.mxu1 %vm138_vm1, %v2038_v45  ;;  %v1449_v24 = vpop.permute.xlu1 %1448 }
0x10b3   :  { %2728 = vset.pattern.permute.xlu0 %v2925_v28  ;;  %v1467_v28 = vadd.f32 1.0, %v2830_v14 }
0x10fe   :  { %v2140_v29 = vpop.trf.xlu1 }
0x10ff   :  { %v2167_v31 = vrot.slane %v2140_v29, %v3005_v19 }
0x1101   :  { %v2169_v36 = vadd.f32 %v2167_v31, %v2162_v18  ;;  %v2168_v40 = vadd.f32 %v2167_v31, %v2158_v15 }
0x1102   :  { %v1431_v22 = vpop.trf.xlu0 }
0x1103   :  { %v1458_v25 = vrot.slane %v1431_v22, %v3005_v19 }
0x1105   :  { %v1459_v30 = vadd.f32 %v1458_v25, %v1449_v24  ;;  %v1460_v32 = vadd.f32 %v1458_v25, %v1453_v8 }
0x114d   :  { %v3253_v1 = vpop.f32.mrf.mxu1 }
0x114f   :  { %v3255_v6 = vpop.f32.mrf.mxu1 }
0x1155   :  { %v2682_v0 = vpop.f32.mrf.mxu1 }
0x1156   :  { %v2493_v11 = vmul.f32 -1.442695, %v2682_v0 }
0x1157   :  { %v2109_v12 = vpop.f32.mrf.mxu1 }
0x1158   :  { %2833 = vpow2.f32 %v2493_v11  ;;  %v2492_v13 = vmul.f32 -1.442695, %v2109_v12 }
0x115a   :  { %2835 = vpow2.f32 %v2492_v13 }
0x115b   :  { %2837 = vrcp.f32 %v1467_v28 }
0x115c   :  { %2839 = vrcp.f32 %v1468_v17 }
0x1165   :  { %v2834_v7 = vpop.eup %2833 }
0x1166   :  { %v2177_v20 = vadd.f32 1.0, %v2834_v7 }
0x1167   :  { %v2836_v21 = vpop.eup %2835 }
0x1168   :  { %2841 = vrcp.f32 %v2177_v20  ;;  %v2176_v23 = vadd.f32 1.0, %v2836_v21  ;;  %v2838_v33 = vpop.eup %2837 }
0x1169   :  { %v1473_v34 = vmul.f32 %v2838_v33, %v1459_v30  ;;  %v2840_v35 = vpop.eup %2839 }
0x116a   :  { %2843 = vrcp.f32 %v2176_v23  ;;  %v1474_v37 = vmul.f32 %v2840_v35, %v1460_v32 }
0x116b   :  { %v1477_v42 = vmul.f32 0.2, %v1473_v34  ;;  %vm1475_vm10 = vcmp.ge.f32.partialorder %v1473_v34, 0.0 }
0x116c   :  { %v1478_v56 = vmul.f32 0.2, %v1474_v37  ;;  %vm1476_vm12 = vcmp.ge.f32.partialorder %v1474_v37, 0.0 }
0x116d   :  { %v1479_v46 = vsel %vm1475_vm10, %v1473_v34, %v1477_v42 }
0x116e   :  { %v1480_v5 = vsel %vm1476_vm12, %v1474_v37, %v1478_v56  ;;  %v1481_v50 = vsel %vm53_vm3, %v1479_v46, -1e+30 }
0x116f   :  { %v1482_v52 = vsel %vm54_vm2, %v1480_v5, -1e+30  ;;  %v1483_v53 = vsel %vm294_vm6, %v1481_v50, -inf }
0x1170   :  { %v1486_v54 = vsel %vm294_vm6, %v1482_v52, -inf }
0x1175   :  { %v2842_v38 = vpop.eup %2841 }
0x1176   :  { %v2183_v41 = vmul.f32 %v2842_v38, %v2169_v36 }
0x1177   :  { %v2844_v43 = vpop.eup %2843 }
0x1178   :  { %vm2185_vm11 = vcmp.ge.f32.partialorder %v2183_v41, 0.0  ;;  %v2187_v44 = vmul.f32 0.2, %v2183_v41  ;;  %v2182_v57 = vmul.f32 %v2844_v43, %v2168_v40 }
0x117a   :  { %v2189_v45 = vsel %vm2185_vm11, %v2183_v41, %v2187_v44  ;;  %vm2184_vm13 = vcmp.ge.f32.partialorder %v2182_v57, 0.0  ;;  %v2186_v19 = vmul.f32 0.2, %v2182_v57 }
0x117b   :  { %v2191_v47 = vsel %vm54_vm2, %v2189_v45, -1e+30 }
0x117c   :  { %v2195_v48 = vsel %vm294_vm6, %v2191_v47, -inf  ;;  %v2188_v4 = vsel %vm2184_vm13, %v2182_v57, %v2186_v19 }
0x117d   :  { %2196 = vmax.xlane.f32.xlu1 %v2195_v48  ;;  %v2190_v49 = vsel %vm53_vm3, %v2188_v4, -1e+30 }
0x117e   :  { %v2192_v51 = vsel %vm294_vm6, %v2190_v49, -inf }
0x117f   :  { %2193 = vmax.xlane.f32.xlu0 %v2192_v51 }
0x1181   :  { %1484 = vmax.xlane.f32.xlu1 %v1483_v53 }
0x1183   :  { %1487 = vmax.xlane.f32.xlu0 %v1486_v54 }
0x1206   :  { %v2197_v55 = vpop.xlane.xlu1 %2196 }
0x1207   :  { %v2199_v3 = vsub.f32 %v2191_v47, %v2197_v55 }
0x1208   :  { %v2194_v58 = vpop.xlane.xlu0 %2193 }
0x1209   :  { %v2202_v59 = vmul.f32 1.442695, %v2199_v3  ;;  %v2198_v60 = vsub.f32 %v2190_v49, %v2194_v58 }
0x120a   :  { %v1485_v61 = vpop.xlane.xlu1 %1484 }
0x120b   :  { %2845 = vpow2.f32 %v2202_v59  ;;  %v2200_v27 = vmul.f32 1.442695, %v2198_v60  ;;  %v1489_v62 = vsub.f32 %v1481_v50, %v1485_v61 }
0x120c   :  { %v1488_v2 = vpop.xlane.xlu0 %1487 }
0x120d   :  { %2847 = vpow2.f32 %v2200_v27  ;;  %v1491_v0 = vmul.f32 1.442695, %v1489_v62  ;;  %v1490_v26 = vsub.f32 %v1482_v52, %v1488_v2 }
0x120f   :  { %2849 = vpow2.f32 %v1491_v0  ;;  %v1493_v11 = vmul.f32 1.442695, %v1490_v26 }
0x1211   :  { %2851 = vpow2.f32 %v1493_v11 }
0x1218   :  { %v2846_v12 = vpop.eup %2845 }
0x1219   :  { %v2207_v13 = vsel %vm294_vm6, %v2846_v12, 0.0 }
0x121a   :  { %v2848_v14 = vpop.eup %2847  ;;  %2208 = vadd.xlane.f32.xlu0 %v2207_v13 }
0x121b   :  { %v2204_v15 = vsel %vm294_vm6, %v2848_v14, 0.0 }
0x121c   :  { %v2850_v16 = vpop.eup %2849  ;;  %2205 = vadd.xlane.f32.xlu1 %v2204_v15 }
0x121d   :  { %v1495_v8 = vsel %vm294_vm6, %v2850_v16, 0.0 }
0x121e   :  { %v2852_v28 = vpop.eup %2851 }
0x121f   :  { %v1498_v17 = vsel %vm294_vm6, %v2852_v28, 0.0 }
0x1220   :  { %1499 = vadd.xlane.f32.xlu0 %v1498_v17  ;;  %1496 = vadd.xlane.f32.xlu1 %v1495_v8 }
0x12a3   :  { %v2209_v18 = vpop.xlane.xlu0 %2208 }
0x12a4   :  { %v2211_v7 = vmax.f32 %v2209_v18, 1e-30 }
0x12a5   :  { %v2206_v20 = vpop.xlane.xlu1 %2205 }
0x12a6   :  { %v2210_v21 = vmax.f32 %v2206_v20, 1e-30  ;;  %2853 = vrcp.f32 %v2211_v7 }
0x12a8   :  { %2855 = vrcp.f32 %v2210_v21 }
0x12a9   :  { %v1500_v22 = vpop.xlane.xlu0 %1499  ;;  %v1497_v23 = vpop.xlane.xlu1 %1496 }
0x12aa   :  { %v1502_v24 = vmax.f32 %v1500_v22, 1e-30  ;;  %v1501_v25 = vmax.f32 %v1497_v23, 1e-30 }
0x12ac   :  { %2857 = vrcp.f32 %v1502_v24 }
0x12ad   :  { %2859 = vrcp.f32 %v1501_v25 }
0x12b3   :  { %v2854_v29 = vpop.eup %2853 }
0x12b4   :  { %v2215_v32 = vmul.f32 %v2854_v29, %v2846_v12 }
0x12b5   :  { %v2856_v30 = vpop.eup %2855 }
0x12b6   :  { %v2214_v31 = vmul.f32 %v2856_v30, %v2848_v14 }
0x12b8   :  { %2687 = vmatprep.mubr.msk.f32.mxu0 %vm294_vm6, %v2214_v31 }
0x12b9   :  { %v2858_v33 = vpop.eup %2857  ;;  %2688 = vmatmul.mubr.msk.f32.vlgmr.msra.gmra.mxu0 %vm294_vm6, %v2215_v32 }
0x12ba   :  { %v2860_v34 = vpop.eup %2859  ;;  %2691 = vmatpush3.msra.mxu0 %v3144_v10  ;;  %v1506_v35 = vmul.f32 %v2858_v33, %v2852_v28 }
0x12bb   :  { %2692 = vmatprep.subr.mxu0 %v3152_v63  ;;  %v1505_v36 = vmul.f32 %v2860_v34, %v2850_v16 }
0x12bc   :  { %2693 = vmatpush3.msra.mxu0 %v3152_v63  ;;  %v2498_v63 = vld [vmem:[%s3306_s5] ss:$0 sm:$0xff] }
0x12bd   :  { %2694 = vmatprep.mubr.msk.f32.mxu0 %vm294_vm6, %v1505_v36 }
0x12be   :  { %2695 = vmatmul.mubr.msk.f32.vlgmr.msra.gmra.mxu0 %vm294_vm6, %v1506_v35 }
0x1379   :  { %v2689_v37 = vpop.f32.mrf.mxu0 }
0x137b   :  { %v2290_v38 = vpop.f32.mrf.mxu0 }
0x137e   :  { %v2696_v40 = vpop.f32.mrf.mxu0 }
0x137f   :  { %v2377_v41 = vadd.f32 %v2696_v40, %v3211_v39 }
0x1380   :  { %v2371_v42 = vpop.f32.mrf.mxu0 }
0x1381   :  { %v2381_v43 = vadd.f32 %v3253_v1, %v2377_v41  ;;  %v2372_v10 = vadd.f32 %v2371_v42, %v3213_v9 }
0x1383   :  { %v2383_v44 = vadd.f32 %v2689_v37, %v2381_v43  ;;  %v2380_v57 = vadd.f32 %v2372_v10, %v3255_v6 }
0x1385   :  { %v2382_v56 = vadd.f32 %v2380_v57, %v2290_v38  ;;  %v2385_v45 = vmul.f32 0.25, %v2383_v44 }
0x1387   :  { %v2384_v19 = vmul.f32 0.25, %v2382_v56  ;;  %v2394_v46 = vadd.f32 %v2498_v63, %v2385_v45 }
0x1389   :  { %v2398_v47 = vsel %vm138_vm1, %v2394_v46, -inf  ;;  %v2393_v48 = vadd.f32 %v2498_v63, %v2384_v19 }
0x138a   :  { %2399 = vmax.xlane.f32.xlu0 %v2398_v47 }
0x138b   :  { %v2395_v39 = vsel %vm138_vm1, %v2393_v48, -inf }
0x138c   :  { %2396 = vmax.xlane.f32.xlu1 %v2395_v39 }
0x1413   :  { %v2400_v1 = vpop.xlane.xlu0 %2399 }
0x1414   :  { %v2402_v9 = vsub.f32 %v2394_v46, %v2400_v1 }
0x1415   :  { %v2397_v4 = vpop.xlane.xlu1 %2396 }
0x1416   :  { %v2405_v5 = vmul.f32 1.442695, %v2402_v9  ;;  %v2401_v6 = vsub.f32 %v2393_v48, %v2397_v4 }
0x1418   :  { %2861 = vpow2.f32 %v2405_v5  ;;  %v2403_v49 = vmul.f32 1.442695, %v2401_v6 }
0x141a   :  { %2863 = vpow2.f32 %v2403_v49 }
0x1425   :  { %v2862_v50 = vpop.eup %2861 }
0x1426   :  { %v2410_v51 = vsel %vm138_vm1, %v2862_v50, 0.0 }
0x1427   :  { %v2864_v52 = vpop.eup %2863  ;;  %2411 = vadd.xlane.f32.xlu0 %v2410_v51 }
0x1428   :  { %v2407_v53 = vsel %vm138_vm1, %v2864_v52, 0.0 }
0x1429   :  { %2408 = vadd.xlane.f32.xlu1 %v2407_v53 }
0x14b0   :  { %v2412_v54 = vpop.xlane.xlu0 %2411 }
0x14b1   :  { %2865 = vlog2.f32 %v2412_v54 }
0x14b2   :  { %v2409_v55 = vpop.xlane.xlu1 %2408 }
0x14b3   :  { %2867 = vlog2.f32 %v2409_v55 }
0x14be   :  { %v2866_v3 = vpop.eup %2865 }
0x14bf   :  { %v2416_v58 = vmul.f32 0.6931472, %v2866_v3 }
0x14c0   :  { %v2868_v59 = vpop.eup %2867 }
0x14c1   :  { %v2418_v60 = vsub.f32 %v2402_v9, %v2416_v58  ;;  %v2414_v61 = vmul.f32 0.6931472, %v2868_v59 }
0x14c3   :  { %2420 = vst.msk [vmem:[%s3307_s6 + $0x8] sm:$0xff] %vm138_vm1, %v2418_v60  ;;  %v2417_v27 = vsub.f32 %v2401_v6, %v2414_v61 }
0x14c5   :  { %2419 = vst.msk [vmem:[%s3307_s6] sm:$0xff] %vm138_vm1, %v2417_v27 }
0x14c6   :  { %2425 = vsyncpa [#allocation3], 1 }
0x14c7   :  { %2426 = vsyncpa [#allocation5], 1 }

</bundles_post_ra>
